<compile_context>
chip_gen: v6e
topology: v6e:2x2x1
jax: 0.10.0
libtpu: 0.0.40
codegen_flags: <defaults>
</compile_context>

<pallas_src>
import functools

import jax
import jax.numpy as jnp
from jax import lax
from jax.experimental import pallas as pl
from jax.experimental.pallas import tpu as pltpu


def _round_up(x, m):
    return (x + m - 1) // m * m


def _default_vmem_limit():
    cap = 128 * 1024 * 1024
    try:
        cap = int(pltpu.get_tpu_info().vmem_capacity_bytes)
    except Exception:
        pass
    # leave ~25% headroom for compiler scratch; ~48 MiB on v7x, ~96 MiB on v5e/v6e
    return max(32 * 1024 * 1024, min(cap * 3 // 4, 100 * 1024 * 1024))


def _distill_kernel(x_ref, wq_ref, bq_ref, cbT_ref, cb_ref, c2h_ref, wd_ref,
                    bd_ref, idx_ref, loss_ref, *,
                    num_k_chunks, k_chunk, total_rows, tile_m, lane_dense_idx):
    """One M-tile of: qformer -> VQ (chunked argmin) -> distiller -> loss terms.

    x_ref   : [TM, D_img]    image embeddings (compute dtype, e.g. bf16)
    wq_ref  : [D_img, D_q]   qformer weight        bq_ref  : [1, D_q]   (f32)
    cbT_ref : [D_q, K_pad]   codebook (transposed, for the distance matmul)
    cb_ref  : [K_pad, D_q]   codebook (row-major, for the one-hot gather)
    c2h_ref : [1, K_pad]     0.5*||c||^2, +inf on padded codes (f32)
    wd_ref  : [D_q, D_img]   distiller weight      bd_ref  : [1, D_img] (f32)
    idx_ref : [1, 1, TM] (lane-dense) or [TM, 1] int32   nearest-code indices
    loss_ref: [1, 1, 8] f32  lane 0 = sum ||quant-z||^2, lane 1 = sum cos(recon,x)
    """
    i = pl.program_id(0)

    x = x_ref[...]                                           # [TM, Dimg] low prec
    x_f32 = x.astype(jnp.float32)

    # --- qformer: linear projection (bf16 MXU, f32 accumulate) -------------
    z = jnp.dot(x, wq_ref[...], preferred_element_type=jnp.float32)
    z = z + bq_ref[...]                                      # [TM, Dq] f32
    z_lp = z.astype(cb_ref.dtype)

    d_q = cb_ref.shape[1]
    big_idx = jnp.int32(jnp.iinfo(jnp.int32).max)
    # lane-index iota hoisted out of the chunk loop
    lane = lax.broadcasted_iota(jnp.int32, (tile_m, k_chunk), 1)

    # --- quantizer: chunked nearest-neighbour search + fused gather --------
    def k_body(c, carry):
        best_s, best_i, quant = carry
        start = pl.multiple_of(c * k_chunk, k_chunk)
        cbT_c = cbT_ref[:, pl.ds(start, k_chunk)]            # [Dq, KC]
        cb_c = cb_ref[pl.ds(start, k_chunk), :]              # [KC, Dq]
        c2h_c = c2h_ref[:, pl.ds(start, k_chunk)]            # [1, KC]
        zc = jnp.dot(z_lp, cbT_c, preferred_element_type=jnp.float32)  # [TM, KC]
        # dist = ||z||^2 + 2*score; same ordering, pads carry +inf already
        score = c2h_c - zc                                   # [TM, KC]
        smin = jnp.min(score, axis=-1, keepdims=True)        # [TM, 1]
        # first index attaining the chunk minimum (torch.argmin tie-break)
        carg = jnp.min(jnp.where(score <= smin, lane, big_idx),
                       axis=-1, keepdims=True)               # [TM, 1] (local)
        # gather the chunk's candidate codebook rows via one-hot matmul
        onehot = (lane == carg).astype(cb_c.dtype)           # [TM, KC]
        cand = jnp.dot(onehot, cb_c,
                       preferred_element_type=jnp.float32
                       ).astype(cb_c.dtype)                  # [TM, Dq] bf16, exact
        better = smin < best_s      # strict '<' keeps earliest-chunk ties
        return (jnp.where(better, smin, best_s),
                jnp.where(better, carg + c * k_chunk, best_i),
                jnp.where(better, cand, quant))

    init = (jnp.full((tile_m, 1), jnp.inf, jnp.float32),
            jnp.zeros((tile_m, 1), jnp.int32),
            jnp.zeros((tile_m, d_q), cb_ref.dtype))
    unroll = True if num_k_chunks <= 8 else 4
    _, best_i, quant = lax.fori_loop(0, num_k_chunks, k_body, init,
                                     unroll=unroll)

    # commit term: f32 ||quant - z||^2 per row, once per tile (not per chunk)
    diff = quant.astype(jnp.float32) - z
    commit_row = jnp.sum(diff * diff, axis=-1, keepdims=True)     # [TM, 1]

    # --- distiller: linear back to image-embed dim --------------------------
    recon = jnp.dot(quant, wd_ref[...], preferred_element_type=jnp.float32)
    recon = recon + bd_ref[...]                                    # [TM, Dimg]

    # --- cosine(recon, x) per row: dot * rsqrt * rsqrt (EUP) ----------------
    eps = jnp.float32(1e-30)
    xr = jnp.sum(x_f32 * recon, axis=-1, keepdims=True)
    xx = jnp.sum(x_f32 * x_f32, axis=-1, keepdims=True)
    rr = jnp.sum(recon * recon, axis=-1, keepdims=True)
    cos_row = (xr * lax.rsqrt(jnp.maximum(xx, eps))
                  * lax.rsqrt(jnp.maximum(rr, eps)))               # [TM, 1]

    # --- per-tile reductions (mask rows beyond the true M) ------------------
    row = i * tile_m + lax.broadcasted_iota(jnp.int32, (tile_m, 1), 0)
    valid = row < total_rows
    commit_sum = jnp.sum(jnp.where(valid, commit_row, 0.0))
    cos_sum = jnp.sum(jnp.where(valid, cos_row, 0.0))

    lane8 = lax.broadcasted_iota(jnp.int32, (1, 1, 8), 2)
    loss_ref[...] = jnp.where(lane8 == 0, commit_sum,
                              jnp.where(lane8 == 1, cos_sum, 0.0))

    if lane_dense_idx:
        idx_ref[...] = best_i.reshape(1, 1, tile_m)
    else:
        idx_ref[...] = best_i


def discrete_model_only_distill(image_embeds, params, *,
                                scale_commit_loss=1.0,
                                compute_dtype=jnp.bfloat16,
                                tile_m=512, k_chunk=512):
    """Forward pass of DiscreteModleOnlyDistill (loss_type='cosine')."""
    B, N, D_img = image_embeds.shape
    M = B * N

    wq = params["wq"].astype(compute_dtype)
    wd = params["wd"].astype(compute_dtype)
    bq = params["bq"].reshape(1, -1).astype(jnp.float32)
    bd = params["bd"].reshape(1, -1).astype(jnp.float32)
    D_q = wq.shape[1]

    cb_f32 = params["codebook"].astype(jnp.float32)
    K = cb_f32.shape[0]

    # Tile sizes: TM multiple of 8 (sublanes), KC multiple of 128 (lanes).
    TM = min(_round_up(tile_m, 8), _round_up(M, 8))
    KC = min(_round_up(k_chunk, 128), _round_up(K, 128))
    K_pad = _round_up(K, KC)
    nkc = K_pad // KC
    G = pl.cdiv(M, TM)

    # Grid-invariant precompute (hoisted out of the kernel): 0.5*||c||^2 with
    # +inf on padded codes so the in-loop z2 add and pad mask disappear.
    c2h = 0.5 * jnp.sum(cb_f32 * cb_f32, axis=-1)              # [K]
    cb = cb_f32.astype(compute_dtype)
    if K_pad != K:
        cb = jnp.pad(cb, ((0, K_pad - K), (0, 0)))
        c2h = jnp.pad(c2h, (0, K_pad - K), constant_values=jnp.inf)
    c2h = c2h.reshape(1, K_pad)
    cbT = cb.T                                                  # [D_q, K_pad]

    x2d = image_embeds.reshape(M, D_img).astype(compute_dtype)
    vmem_limit = _default_vmem_limit()

    def run(fast):
        kernel = functools.partial(
            _distill_kernel, num_k_chunks=nkc, k_chunk=KC,
            total_rows=M, tile_m=TM, lane_dense_idx=fast)

        def resident(shape):
            zero_map = lambda i: (0,) * len(shape)
            if fast:
                # grid-invariant operands: single buffer (no double-buffer DMA)
                return pl.BlockSpec(shape, zero_map,
                                    pipeline_mode=pl.Buffered(1))
            return pl.BlockSpec(shape, zero_map)

        in_specs = [
            pl.BlockSpec((TM, D_img), lambda i: (i, 0)),   # x (tiled over M)
            resident((D_img, D_q)),                        # Wq
            resident((1, D_q)),                            # bq
            resident((D_q, K_pad)),                        # codebook^T (distance)
            resident((K_pad, D_q)),                        # codebook (gather)
            resident((1, K_pad)),                          # 0.5*||c||^2 (+inf pad)
            resident((D_q, D_img)),                        # Wd
            resident((1, D_img)),                          # bd
        ]
        if fast:
            idx_shape = jax.ShapeDtypeStruct((G, 1, TM), jnp.int32)
            idx_spec = pl.BlockSpec((1, 1, TM), lambda i: (i, 0, 0))
        else:
            idx_shape = jax.ShapeDtypeStruct((M, 1), jnp.int32)
            idx_spec = pl.BlockSpec((TM, 1), lambda i: (i, 0))
        loss_shape = jax.ShapeDtypeStruct((G, 1, 8), jnp.float32)
        loss_spec = pl.BlockSpec((1, 1, 8), lambda i: (i, 0, 0))

        idx, loss_p = pl.pallas_call(
            kernel,
            out_shape=(idx_shape, loss_shape),
            grid=(G,),
            in_specs=in_specs,
            out_specs=(idx_spec, loss_spec),
            compiler_params=pltpu.CompilerParams(
                dimension_semantics=("parallel",),
                vmem_limit_bytes=vmem_limit),
        )(x2d, wq, bq, cbT, cb, c2h, wd, bd)

        if fast:
            indices = idx.reshape(G * TM)[:M].reshape(B, N)
        else:
            indices = idx.reshape(B, N)
        return indices, loss_p

    try:
        indices, loss_p = run(True)
    except Exception:
        # conservative layout fallback (no Buffered(1), sublane-major indices)
        indices, loss_p = run(False)

    # scalar finishing (trivial JAX glue over G partials)
    commit_loss = jnp.sum(loss_p[:, 0, 0]) / (M * D_q)       # mse(quant, z)
    distill_loss = 1.0 - jnp.sum(loss_p[:, 0, 1]) / M        # cosine_loss(recon, x)
    total_loss = distill_loss + scale_commit_loss * commit_loss
    # TODO(synk): forward-only; VQ straight-through / stop_gradient split for
    #             training gradients is not implemented here.
    return {
        "total_loss": total_loss,
        "distill_loss": distill_loss,
        "commit_loss": commit_loss,
        "indices": indices,
    }


def _init_params(key, d_img, d_q, n_codes):
    k1, k2, k3, k4, k5 = jax.random.split(key, 5)
    return {
        "wq": jax.random.normal(k1, (d_img, d_q), jnp.float32) * 0.05,
        "bq": jax.random.normal(k2, (1, d_q), jnp.float32) * 0.01,
        "codebook": jax.random.normal(k3, (n_codes, d_q), jnp.float32) * 0.05,
        "wd": jax.random.normal(k4, (d_q, d_img), jnp.float32) * 0.05,
        "bd": jax.random.normal(k5, (1, d_img), jnp.float32) * 0.01,
    }


if __name__ == "__main__":
    key = jax.random.PRNGKey(0)
    k_x, k_p = jax.random.split(key)

    B, N, D_IMG, D_Q, K = 2, 8, 128, 64, 256
    image_embeds = jax.random.normal(k_x, (B, N, D_IMG), jnp.float32)
    params = _init_params(k_p, D_IMG, D_Q, K)

    out = discrete_model_only_distill(image_embeds, params,
                                      scale_commit_loss=1.0)
    out = jax.block_until_ready(out)

    assert out["indices"].shape == (B, N)
    assert out["total_loss"].shape == ()
    assert bool(jnp.isfinite(out["total_loss"]))
    assert bool(jnp.isfinite(out["distill_loss"]))
    assert bool(jnp.isfinite(out["commit_loss"]))
    assert bool(jnp.all(out["indices"] >= 0)) and bool(jnp.all(out["indices"] < K))
    print("KERNEL_OK")
</pallas_src>

<mosaic_0001>
module attributes {stable_mosaic.version = 11 : i64} {
  func.func @_distill_kernel(%arg0: i32, %arg1: memref<16x128xbf16, #tpu.memory_space<vmem>>, %arg2: memref<128x64xbf16, #tpu.memory_space<vmem>>, %arg3: memref<1x64xf32, #tpu.memory_space<vmem>>, %arg4: memref<64x256xbf16, #tpu.memory_space<vmem>>, %arg5: memref<256x64xbf16, #tpu.memory_space<vmem>>, %arg6: memref<1x256xf32, #tpu.memory_space<vmem>>, %arg7: memref<64x128xbf16, #tpu.memory_space<vmem>>, %arg8: memref<1x128xf32, #tpu.memory_space<vmem>>, %arg9: memref<1x1x16xi32, #tpu.memory_space<vmem>>, %arg10: memref<1x1x8xf32, #tpu.memory_space<vmem>>) attributes {dimension_semantics = [#tpu.dimension_semantics<parallel>], iteration_bounds = array<i64: 1>, scalar_prefetch = 0 : i64, scratch_operands = 0 : i64, tpu.core_type = #tpu.core_type<tc>, window_params = [{transform_indices = @transform_0, window_bounds = array<i64: 16, 128>}, {pipeline_mode = #tpu.pipeline_mode<synchronous>, transform_indices = @transform_1, window_bounds = array<i64: 128, 64>}, {pipeline_mode = #tpu.pipeline_mode<synchronous>, transform_indices = @transform_2, window_bounds = array<i64: 1, 64>}, {pipeline_mode = #tpu.pipeline_mode<synchronous>, transform_indices = @transform_3, window_bounds = array<i64: 64, 256>}, {pipeline_mode = #tpu.pipeline_mode<synchronous>, transform_indices = @transform_4, window_bounds = array<i64: 256, 64>}, {pipeline_mode = #tpu.pipeline_mode<synchronous>, transform_indices = @transform_5, window_bounds = array<i64: 1, 256>}, {pipeline_mode = #tpu.pipeline_mode<synchronous>, transform_indices = @transform_6, window_bounds = array<i64: 64, 128>}, {pipeline_mode = #tpu.pipeline_mode<synchronous>, transform_indices = @transform_7, window_bounds = array<i64: 1, 128>}, {transform_indices = @transform_8, window_bounds = array<i64: 1, 1, 16>}, {transform_indices = @transform_9, window_bounds = array<i64: 1, 1, 8>}]} {
    %c0 = arith.constant 0 : index
    %c0_0 = arith.constant 0 : index
    %0 = vector.load %arg1[%c0, %c0_0] : memref<16x128xbf16, #tpu.memory_space<vmem>>, vector<16x128xbf16>
    %1 = arith.extf %0 : vector<16x128xbf16> to vector<16x128xf32>
    %c0_1 = arith.constant 0 : index
    %c0_2 = arith.constant 0 : index
    %2 = vector.load %arg2[%c0_1, %c0_2] : memref<128x64xbf16, #tpu.memory_space<vmem>>, vector<128x64xbf16>
    %cst = arith.constant dense<0.000000e+00> : vector<16x64xf32>
    %3 = tpu.matmul %0, %2, %cst {dimension_numbers = #tpu.dot_dimension_numbers<[1], [0], [0], [1], [0, 0, 1, 1], [], []>} : vector<16x128xbf16>, vector<128x64xbf16>, vector<16x64xf32> -> vector<16x64xf32>
    %c0_3 = arith.constant 0 : index
    %c0_4 = arith.constant 0 : index
    %4 = vector.load %arg3[%c0_3, %c0_4] : memref<1x64xf32, #tpu.memory_space<vmem>>, vector<1x64xf32>
    %5 = vector.broadcast %4 : vector<1x64xf32> to vector<16x64xf32>
    %6 = arith.addf %3, %5 : vector<16x64xf32>
    %7 = arith.truncf %6 : vector<16x64xf32> to vector<16x64xbf16>
    %8 = tpu.iota {dimensions = array<i32: 1>} : vector<16x256xi32>
    %cst_5 = arith.constant 0x7F800000 : f32
    %9 = vector.broadcast %cst_5 : f32 to vector<16x1xf32>
    %c0_i32 = arith.constant 0 : i32
    %10 = vector.broadcast %c0_i32 : i32 to vector<16x1xi32>
    %cst_6 = arith.constant 0.000000e+00 : bf16
    %11 = vector.broadcast %cst_6 : bf16 to vector<16x64xbf16>
    %c2147483647_i32 = arith.constant 2147483647 : i32
    %c0_i32_7 = arith.constant 0 : i32
    %c256_i32 = arith.constant 256 : i32
    %12 = arith.muli %c0_i32_7, %c256_i32 : i32
    %13 = tpu.assume_multiple %12, 256 : i32
    %c0_8 = arith.constant 0 : index
    %14 = arith.index_cast %13 : i32 to index
    %15 = vector.load %arg4[%c0_8, %14] : memref<64x256xbf16, #tpu.memory_space<vmem>>, vector<64x256xbf16>
    %16 = arith.index_cast %13 : i32 to index
    %c0_9 = arith.constant 0 : index
    %17 = vector.load %arg5[%16, %c0_9] : memref<256x64xbf16, #tpu.memory_space<vmem>>, vector<256x64xbf16>
    %c0_10 = arith.constant 0 : index
    %18 = arith.index_cast %13 : i32 to index
    %19 = vector.load %arg6[%c0_10, %18] : memref<1x256xf32, #tpu.memory_space<vmem>>, vector<1x256xf32>
    %cst_11 = arith.constant dense<0.000000e+00> : vector<16x256xf32>
    %20 = tpu.matmul %7, %15, %cst_11 {dimension_numbers = #tpu.dot_dimension_numbers<[1], [0], [0], [1], [0, 0, 1, 1], [], []>} : vector<16x64xbf16>, vector<64x256xbf16>, vector<16x256xf32> -> vector<16x256xf32>
    %21 = vector.broadcast %19 : vector<1x256xf32> to vector<16x256xf32>
    %22 = arith.subf %21, %20 : vector<16x256xf32>
    %cst_12 = arith.constant dense<0x7F800000> : vector<16xf32>
    %23 = vector.multi_reduction <minimumf>, %22, %cst_12 [1] : vector<16x256xf32> to vector<16xf32>
    %24 = vector.shape_cast %23 : vector<16xf32> to vector<16x1xf32>
    %25 = vector.broadcast %24 : vector<16x1xf32> to vector<16x256xf32>
    %26 = arith.cmpf ole, %22, %25 : vector<16x256xf32>
    %27 = vector.broadcast %c2147483647_i32 : i32 to vector<16x256xi32>
    %28 = arith.select %26, %8, %27 : vector<16x256xi1>, vector<16x256xi32>
    %cst_13 = arith.constant dense<2147483647> : vector<16xi32>
    %29 = vector.multi_reduction <minsi>, %28, %cst_13 [1] : vector<16x256xi32> to vector<16xi32>
    %30 = vector.shape_cast %29 : vector<16xi32> to vector<16x1xi32>
    %31 = vector.broadcast %30 : vector<16x1xi32> to vector<16x256xi32>
    %32 = arith.cmpi eq, %8, %31 : vector<16x256xi32>
    %33 = arith.extui %32 : vector<16x256xi1> to vector<16x256xi32>
    %34 = arith.sitofp %33 : vector<16x256xi32> to vector<16x256xf32>
    %35 = arith.truncf %34 : vector<16x256xf32> to vector<16x256xbf16>
    %cst_14 = arith.constant dense<0.000000e+00> : vector<16x64xf32>
    %36 = tpu.matmul %35, %17, %cst_14 {dimension_numbers = #tpu.dot_dimension_numbers<[1], [0], [0], [1], [0, 0, 1, 1], [], []>} : vector<16x256xbf16>, vector<256x64xbf16>, vector<16x64xf32> -> vector<16x64xf32>
    %37 = arith.truncf %36 : vector<16x64xf32> to vector<16x64xbf16>
    %38 = arith.cmpf olt, %24, %9 : vector<16x1xf32>
    %39 = arith.select %38, %24, %9 : vector<16x1xi1>, vector<16x1xf32>
    %c256_i32_15 = arith.constant 256 : i32
    %40 = arith.muli %c0_i32_7, %c256_i32_15 : i32
    %41 = vector.broadcast %40 : i32 to vector<16x1xi32>
    %42 = arith.addi %30, %41 : vector<16x1xi32>
    %43 = arith.select %38, %42, %10 : vector<16x1xi1>, vector<16x1xi32>
    %44 = vector.shape_cast %38 : vector<16x1xi1> to vector<16x1xi1>
    %45 = vector.broadcast %44 : vector<16x1xi1> to vector<16x64xi1>
    %46 = arith.select %45, %37, %11 : vector<16x64xi1>, vector<16x64xbf16>
    %c1_i32 = arith.constant 1 : i32
    %47 = arith.extf %46 : vector<16x64xbf16> to vector<16x64xf32>
    %48 = arith.subf %47, %6 : vector<16x64xf32>
    %49 = arith.mulf %48, %48 : vector<16x64xf32>
    %cst_16 = arith.constant dense<0.000000e+00> : vector<16xf32>
    %50 = vector.multi_reduction <add>, %49, %cst_16 [1] : vector<16x64xf32> to vector<16xf32>
    %51 = vector.shape_cast %50 : vector<16xf32> to vector<16x1xf32>
    %c0_17 = arith.constant 0 : index
    %c0_18 = arith.constant 0 : index
    %52 = vector.load %arg7[%c0_17, %c0_18] : memref<64x128xbf16, #tpu.memory_space<vmem>>, vector<64x128xbf16>
    %cst_19 = arith.constant dense<0.000000e+00> : vector<16x128xf32>
    %53 = tpu.matmul %46, %52, %cst_19 {dimension_numbers = #tpu.dot_dimension_numbers<[1], [0], [0], [1], [0, 0, 1, 1], [], []>} : vector<16x64xbf16>, vector<64x128xbf16>, vector<16x128xf32> -> vector<16x128xf32>
    %c0_20 = arith.constant 0 : index
    %c0_21 = arith.constant 0 : index
    %54 = vector.load %arg8[%c0_20, %c0_21] : memref<1x128xf32, #tpu.memory_space<vmem>>, vector<1x128xf32>
    %55 = vector.broadcast %54 : vector<1x128xf32> to vector<16x128xf32>
    %56 = arith.addf %53, %55 : vector<16x128xf32>
    %57 = arith.mulf %1, %56 : vector<16x128xf32>
    %cst_22 = arith.constant dense<0.000000e+00> : vector<16xf32>
    %58 = vector.multi_reduction <add>, %57, %cst_22 [1] : vector<16x128xf32> to vector<16xf32>
    %59 = vector.shape_cast %58 : vector<16xf32> to vector<16x1xf32>
    %60 = arith.mulf %1, %1 : vector<16x128xf32>
    %cst_23 = arith.constant dense<0.000000e+00> : vector<16xf32>
    %61 = vector.multi_reduction <add>, %60, %cst_23 [1] : vector<16x128xf32> to vector<16xf32>
    %62 = vector.shape_cast %61 : vector<16xf32> to vector<16x1xf32>
    %63 = arith.mulf %56, %56 : vector<16x128xf32>
    %cst_24 = arith.constant dense<0.000000e+00> : vector<16xf32>
    %64 = vector.multi_reduction <add>, %63, %cst_24 [1] : vector<16x128xf32> to vector<16xf32>
    %65 = vector.shape_cast %64 : vector<16xf32> to vector<16x1xf32>
    %cst_25 = arith.constant 1.000000e-30 : f32
    %66 = vector.broadcast %cst_25 : f32 to vector<16x1xf32>
    %67 = arith.maximumf %62, %66 : vector<16x1xf32>
    %68 = math.rsqrt %67 : vector<16x1xf32>
    %69 = arith.mulf %59, %68 : vector<16x1xf32>
    %cst_26 = arith.constant 1.000000e-30 : f32
    %70 = vector.broadcast %cst_26 : f32 to vector<16x1xf32>
    %71 = arith.maximumf %65, %70 : vector<16x1xf32>
    %72 = math.rsqrt %71 : vector<16x1xf32>
    %73 = arith.mulf %69, %72 : vector<16x1xf32>
    %c16_i32 = arith.constant 16 : i32
    %74 = arith.muli %arg0, %c16_i32 : i32
    %75 = tpu.iota {dimensions = array<i32: 0>} : vector<16x1xi32>
    %76 = vector.broadcast %74 : i32 to vector<16x1xi32>
    %77 = arith.addi %76, %75 : vector<16x1xi32>
    %c16_i32_27 = arith.constant 16 : i32
    %78 = vector.broadcast %c16_i32_27 : i32 to vector<16x1xi32>
    %79 = arith.cmpi slt, %77, %78 : vector<16x1xi32>
    %cst_28 = arith.constant 0.000000e+00 : f32
    %80 = vector.broadcast %cst_28 : f32 to vector<16x1xf32>
    %81 = arith.select %79, %51, %80 : vector<16x1xi1>, vector<16x1xf32>
    %82 = vector.shape_cast %81 : vector<16x1xf32> to vector<1x16x1xf32>
    %cst_29 = arith.constant dense<0.000000e+00> : vector<1xf32>
    %83 = vector.multi_reduction <add>, %82, %cst_29 [1, 2] : vector<1x16x1xf32> to vector<1xf32>
    %84 = vector.shape_cast %83 : vector<1xf32> to vector<1x1x1xf32>
    %85 = vector.extract %84[0, 0, 0] : f32 from vector<1x1x1xf32>
    %cst_30 = arith.constant 0.000000e+00 : f32
    %86 = vector.broadcast %cst_30 : f32 to vector<16x1xf32>
    %87 = arith.select %79, %73, %86 : vector<16x1xi1>, vector<16x1xf32>
    %88 = vector.shape_cast %87 : vector<16x1xf32> to vector<1x16x1xf32>
    %cst_31 = arith.constant dense<0.000000e+00> : vector<1xf32>
    %89 = vector.multi_reduction <add>, %88, %cst_31 [1, 2] : vector<1x16x1xf32> to vector<1xf32>
    %90 = vector.shape_cast %89 : vector<1xf32> to vector<1x1x1xf32>
    %91 = vector.extract %90[0, 0, 0] : f32 from vector<1x1x1xf32>
    %92 = tpu.iota {dimensions = array<i32: 2>} : vector<1x1x8xi32>
    %c0_i32_32 = arith.constant 0 : i32
    %93 = vector.broadcast %c0_i32_32 : i32 to vector<1x1x8xi32>
    %94 = arith.cmpi eq, %92, %93 : vector<1x1x8xi32>
    %c1_i32_33 = arith.constant 1 : i32
    %95 = vector.broadcast %c1_i32_33 : i32 to vector<1x1x8xi32>
    %96 = arith.cmpi eq, %92, %95 : vector<1x1x8xi32>
    %cst_34 = arith.constant 0.000000e+00 : f32
    %97 = vector.broadcast %91 : f32 to vector<1x1x8xf32>
    %98 = vector.broadcast %cst_34 : f32 to vector<1x1x8xf32>
    %99 = arith.select %96, %97, %98 : vector<1x1x8xi1>, vector<1x1x8xf32>
    %100 = vector.broadcast %85 : f32 to vector<1x1x8xf32>
    %101 = arith.select %94, %100, %99 : vector<1x1x8xi1>, vector<1x1x8xf32>
    %c0_35 = arith.constant 0 : index
    %c0_36 = arith.constant 0 : index
    %c0_37 = arith.constant 0 : index
    %102 = vector.load %arg10[%c0_35, %c0_36, %c0_37] : memref<1x1x8xf32, #tpu.memory_space<vmem>>, vector<1x1x8xf32>
    tpu.vector_store %arg10[%c0_35, %c0_36, %c0_37], %101 {strides = array<i32>} : memref<1x1x8xf32, #tpu.memory_space<vmem>>, vector<1x1x8xf32>,
    %103 = vector.shape_cast %43 : vector<16x1xi32> to vector<1x1x16xi32>
    %c0_38 = arith.constant 0 : index
    %c0_39 = arith.constant 0 : index
    %c0_40 = arith.constant 0 : index
    %104 = vector.load %arg9[%c0_38, %c0_39, %c0_40] : memref<1x1x16xi32, #tpu.memory_space<vmem>>, vector<1x1x16xi32>
    tpu.vector_store %arg9[%c0_38, %c0_39, %c0_40], %103 {strides = array<i32>} : memref<1x1x16xi32, #tpu.memory_space<vmem>>, vector<1x1x16xi32>,
    return
  }
  func.func @transform_0(%arg0: i32) -> (i32, i32) {
    %c0_i32 = arith.constant 0 : i32
    %c0_i32_0 = arith.constant 0 : i32
    return %arg0, %c0_i32 : i32, i32
  }
  func.func @transform_1(%arg0: i32) -> (i32, i32) {
    %c0_i32 = arith.constant 0 : i32
    %c0_i32_0 = arith.constant 0 : i32
    %c0_i32_1 = arith.constant 0 : i32
    return %c0_i32, %c0_i32_0 : i32, i32
  }
  func.func @transform_2(%arg0: i32) -> (i32, i32) {
    %c0_i32 = arith.constant 0 : i32
    %c0_i32_0 = arith.constant 0 : i32
    %c0_i32_1 = arith.constant 0 : i32
    return %c0_i32, %c0_i32_0 : i32, i32
  }
  func.func @transform_3(%arg0: i32) -> (i32, i32) {
    %c0_i32 = arith.constant 0 : i32
    %c0_i32_0 = arith.constant 0 : i32
    %c0_i32_1 = arith.constant 0 : i32
    return %c0_i32, %c0_i32_0 : i32, i32
  }
  func.func @transform_4(%arg0: i32) -> (i32, i32) {
    %c0_i32 = arith.constant 0 : i32
    %c0_i32_0 = arith.constant 0 : i32
    %c0_i32_1 = arith.constant 0 : i32
    return %c0_i32, %c0_i32_0 : i32, i32
  }
  func.func @transform_5(%arg0: i32) -> (i32, i32) {
    %c0_i32 = arith.constant 0 : i32
    %c0_i32_0 = arith.constant 0 : i32
    %c0_i32_1 = arith.constant 0 : i32
    return %c0_i32, %c0_i32_0 : i32, i32
  }
  func.func @transform_6(%arg0: i32) -> (i32, i32) {
    %c0_i32 = arith.constant 0 : i32
    %c0_i32_0 = arith.constant 0 : i32
    %c0_i32_1 = arith.constant 0 : i32
    return %c0_i32, %c0_i32_0 : i32, i32
  }
  func.func @transform_7(%arg0: i32) -> (i32, i32) {
    %c0_i32 = arith.constant 0 : i32
    %c0_i32_0 = arith.constant 0 : i32
    %c0_i32_1 = arith.constant 0 : i32
    return %c0_i32, %c0_i32_0 : i32, i32
  }
  func.func @transform_8(%arg0: i32) -> (i32, i32, i32) {
    %c0_i32 = arith.constant 0 : i32
    %c0_i32_0 = arith.constant 0 : i32
    %c0_i32_1 = arith.constant 0 : i32
    return %arg0, %c0_i32, %c0_i32_0 : i32, i32, i32
  }
  func.func @transform_9(%arg0: i32) -> (i32, i32, i32) {
    %c0_i32 = arith.constant 0 : i32
    %c0_i32_0 = arith.constant 0 : i32
    %c0_i32_1 = arith.constant 0 : i32
    return %arg0, %c0_i32, %c0_i32_0 : i32, i32, i32
  }
}

module attributes {stable_mosaic.version = 11 : i64} {
  func.func @_distill_kernel(%arg0: i32, %arg1: memref<16x128xbf16, #tpu.memory_space<vmem>>, %arg2: memref<128x64xbf16, #tpu.memory_space<vmem>>, %arg3: memref<1x64xf32, #tpu.memory_space<vmem>>, %arg4: memref<64x256xbf16, #tpu.memory_space<vmem>>, %arg5: memref<256x64xbf16, #tpu.memory_space<vmem>>, %arg6: memref<1x256xf32, #tpu.memory_space<vmem>>, %arg7: memref<64x128xbf16, #tpu.memory_space<vmem>>, %arg8: memref<1x128xf32, #tpu.memory_space<vmem>>, %arg9: memref<16x1xi32, #tpu.memory_space<vmem>>, %arg10: memref<1x1x8xf32, #tpu.memory_space<vmem>>) attributes {dimension_semantics = [#tpu.dimension_semantics<parallel>], iteration_bounds = array<i64: 1>, scalar_prefetch = 0 : i64, scratch_operands = 0 : i64, tpu.core_type = #tpu.core_type<tc>, window_params = [{transform_indices = @transform_0, window_bounds = array<i64: 16, 128>}, {pipeline_mode = #tpu.pipeline_mode<synchronous>, transform_indices = @transform_1, window_bounds = array<i64: 128, 64>}, {pipeline_mode = #tpu.pipeline_mode<synchronous>, transform_indices = @transform_2, window_bounds = array<i64: 1, 64>}, {pipeline_mode = #tpu.pipeline_mode<synchronous>, transform_indices = @transform_3, window_bounds = array<i64: 64, 256>}, {pipeline_mode = #tpu.pipeline_mode<synchronous>, transform_indices = @transform_4, window_bounds = array<i64: 256, 64>}, {pipeline_mode = #tpu.pipeline_mode<synchronous>, transform_indices = @transform_5, window_bounds = array<i64: 1, 256>}, {pipeline_mode = #tpu.pipeline_mode<synchronous>, transform_indices = @transform_6, window_bounds = array<i64: 64, 128>}, {pipeline_mode = #tpu.pipeline_mode<synchronous>, transform_indices = @transform_7, window_bounds = array<i64: 1, 128>}, {transform_indices = @transform_8, window_bounds = array<i64: 16, 1>}, {transform_indices = @transform_9, window_bounds = array<i64: 1, 1, 8>}]} {
    %c0 = arith.constant 0 : index
    %c0_0 = arith.constant 0 : index
    %0 = vector.load %arg1[%c0, %c0_0] : memref<16x128xbf16, #tpu.memory_space<vmem>>, vector<16x128xbf16>
    %1 = arith.extf %0 : vector<16x128xbf16> to vector<16x128xf32>
    %c0_1 = arith.constant 0 : index
    %c0_2 = arith.constant 0 : index
    %2 = vector.load %arg2[%c0_1, %c0_2] : memref<128x64xbf16, #tpu.memory_space<vmem>>, vector<128x64xbf16>
    %cst = arith.constant dense<0.000000e+00> : vector<16x64xf32>
    %3 = tpu.matmul %0, %2, %cst {dimension_numbers = #tpu.dot_dimension_numbers<[1], [0], [0], [1], [0, 0, 1, 1], [], []>} : vector<16x128xbf16>, vector<128x64xbf16>, vector<16x64xf32> -> vector<16x64xf32>
    %c0_3 = arith.constant 0 : index
    %c0_4 = arith.constant 0 : index
    %4 = vector.load %arg3[%c0_3, %c0_4] : memref<1x64xf32, #tpu.memory_space<vmem>>, vector<1x64xf32>
    %5 = vector.broadcast %4 : vector<1x64xf32> to vector<16x64xf32>
    %6 = arith.addf %3, %5 : vector<16x64xf32>
    %7 = arith.truncf %6 : vector<16x64xf32> to vector<16x64xbf16>
    %8 = tpu.iota {dimensions = array<i32: 1>} : vector<16x256xi32>
    %cst_5 = arith.constant 0x7F800000 : f32
    %9 = vector.broadcast %cst_5 : f32 to vector<16x1xf32>
    %c0_i32 = arith.constant 0 : i32
    %10 = vector.broadcast %c0_i32 : i32 to vector<16x1xi32>
    %cst_6 = arith.constant 0.000000e+00 : bf16
    %11 = vector.broadcast %cst_6 : bf16 to vector<16x64xbf16>
    %c2147483647_i32 = arith.constant 2147483647 : i32
    %c0_i32_7 = arith.constant 0 : i32
    %c256_i32 = arith.constant 256 : i32
    %12 = arith.muli %c0_i32_7, %c256_i32 : i32
    %13 = tpu.assume_multiple %12, 256 : i32
    %c0_8 = arith.constant 0 : index
    %14 = arith.index_cast %13 : i32 to index
    %15 = vector.load %arg4[%c0_8, %14] : memref<64x256xbf16, #tpu.memory_space<vmem>>, vector<64x256xbf16>
    %16 = arith.index_cast %13 : i32 to index
    %c0_9 = arith.constant 0 : index
    %17 = vector.load %arg5[%16, %c0_9] : memref<256x64xbf16, #tpu.memory_space<vmem>>, vector<256x64xbf16>
    %c0_10 = arith.constant 0 : index
    %18 = arith.index_cast %13 : i32 to index
    %19 = vector.load %arg6[%c0_10, %18] : memref<1x256xf32, #tpu.memory_space<vmem>>, vector<1x256xf32>
    %cst_11 = arith.constant dense<0.000000e+00> : vector<16x256xf32>
    %20 = tpu.matmul %7, %15, %cst_11 {dimension_numbers = #tpu.dot_dimension_numbers<[1], [0], [0], [1], [0, 0, 1, 1], [], []>} : vector<16x64xbf16>, vector<64x256xbf16>, vector<16x256xf32> -> vector<16x256xf32>
    %21 = vector.broadcast %19 : vector<1x256xf32> to vector<16x256xf32>
    %22 = arith.subf %21, %20 : vector<16x256xf32>
    %cst_12 = arith.constant dense<0x7F800000> : vector<16xf32>
    %23 = vector.multi_reduction <minimumf>, %22, %cst_12 [1] : vector<16x256xf32> to vector<16xf32>
    %24 = vector.shape_cast %23 : vector<16xf32> to vector<16x1xf32>
    %25 = vector.broadcast %24 : vector<16x1xf32> to vector<16x256xf32>
    %26 = arith.cmpf ole, %22, %25 : vector<16x256xf32>
    %27 = vector.broadcast %c2147483647_i32 : i32 to vector<16x256xi32>
    %28 = arith.select %26, %8, %27 : vector<16x256xi1>, vector<16x256xi32>
    %cst_13 = arith.constant dense<2147483647> : vector<16xi32>
    %29 = vector.multi_reduction <minsi>, %28, %cst_13 [1] : vector<16x256xi32> to vector<16xi32>
    %30 = vector.shape_cast %29 : vector<16xi32> to vector<16x1xi32>
    %31 = vector.broadcast %30 : vector<16x1xi32> to vector<16x256xi32>
    %32 = arith.cmpi eq, %8, %31 : vector<16x256xi32>
    %33 = arith.extui %32 : vector<16x256xi1> to vector<16x256xi32>
    %34 = arith.sitofp %33 : vector<16x256xi32> to vector<16x256xf32>
    %35 = arith.truncf %34 : vector<16x256xf32> to vector<16x256xbf16>
    %cst_14 = arith.constant dense<0.000000e+00> : vector<16x64xf32>
    %36 = tpu.matmul %35, %17, %cst_14 {dimension_numbers = #tpu.dot_dimension_numbers<[1], [0], [0], [1], [0, 0, 1, 1], [], []>} : vector<16x256xbf16>, vector<256x64xbf16>, vector<16x64xf32> -> vector<16x64xf32>
    %37 = arith.truncf %36 : vector<16x64xf32> to vector<16x64xbf16>
    %38 = arith.cmpf olt, %24, %9 : vector<16x1xf32>
    %39 = arith.select %38, %24, %9 : vector<16x1xi1>, vector<16x1xf32>
    %c256_i32_15 = arith.constant 256 : i32
    %40 = arith.muli %c0_i32_7, %c256_i32_15 : i32
    %41 = vector.broadcast %40 : i32 to vector<16x1xi32>
    %42 = arith.addi %30, %41 : vector<16x1xi32>
    %43 = arith.select %38, %42, %10 : vector<16x1xi1>, vector<16x1xi32>
    %44 = vector.shape_cast %38 : vector<16x1xi1> to vector<16x1xi1>
    %45 = vector.broadcast %44 : vector<16x1xi1> to vector<16x64xi1>
    %46 = arith.select %45, %37, %11 : vector<16x64xi1>, vector<16x64xbf16>
    %c1_i32 = arith.constant 1 : i32
    %47 = arith.extf %46 : vector<16x64xbf16> to vector<16x64xf32>
    %48 = arith.subf %47, %6 : vector<16x64xf32>
    %49 = arith.mulf %48, %48 : vector<16x64xf32>
    %cst_16 = arith.constant dense<0.000000e+00> : vector<16xf32>
    %50 = vector.multi_reduction <add>, %49, %cst_16 [1] : vector<16x64xf32> to vector<16xf32>
    %51 = vector.shape_cast %50 : vector<16xf32> to vector<16x1xf32>
    %c0_17 = arith.constant 0 : index
    %c0_18 = arith.constant 0 : index
    %52 = vector.load %arg7[%c0_17, %c0_18] : memref<64x128xbf16, #tpu.memory_space<vmem>>, vector<64x128xbf16>
    %cst_19 = arith.constant dense<0.000000e+00> : vector<16x128xf32>
    %53 = tpu.matmul %46, %52, %cst_19 {dimension_numbers = #tpu.dot_dimension_numbers<[1], [0], [0], [1], [0, 0, 1, 1], [], []>} : vector<16x64xbf16>, vector<64x128xbf16>, vector<16x128xf32> -> vector<16x128xf32>
    %c0_20 = arith.constant 0 : index
    %c0_21 = arith.constant 0 : index
    %54 = vector.load %arg8[%c0_20, %c0_21] : memref<1x128xf32, #tpu.memory_space<vmem>>, vector<1x128xf32>
    %55 = vector.broadcast %54 : vector<1x128xf32> to vector<16x128xf32>
    %56 = arith.addf %53, %55 : vector<16x128xf32>
    %57 = arith.mulf %1, %56 : vector<16x128xf32>
    %cst_22 = arith.constant dense<0.000000e+00> : vector<16xf32>
    %58 = vector.multi_reduction <add>, %57, %cst_22 [1] : vector<16x128xf32> to vector<16xf32>
    %59 = vector.shape_cast %58 : vector<16xf32> to vector<16x1xf32>
    %60 = arith.mulf %1, %1 : vector<16x128xf32>
    %cst_23 = arith.constant dense<0.000000e+00> : vector<16xf32>
    %61 = vector.multi_reduction <add>, %60, %cst_23 [1] : vector<16x128xf32> to vector<16xf32>
    %62 = vector.shape_cast %61 : vector<16xf32> to vector<16x1xf32>
    %63 = arith.mulf %56, %56 : vector<16x128xf32>
    %cst_24 = arith.constant dense<0.000000e+00> : vector<16xf32>
    %64 = vector.multi_reduction <add>, %63, %cst_24 [1] : vector<16x128xf32> to vector<16xf32>
    %65 = vector.shape_cast %64 : vector<16xf32> to vector<16x1xf32>
    %cst_25 = arith.constant 1.000000e-30 : f32
    %66 = vector.broadcast %cst_25 : f32 to vector<16x1xf32>
    %67 = arith.maximumf %62, %66 : vector<16x1xf32>
    %68 = math.rsqrt %67 : vector<16x1xf32>
    %69 = arith.mulf %59, %68 : vector<16x1xf32>
    %cst_26 = arith.constant 1.000000e-30 : f32
    %70 = vector.broadcast %cst_26 : f32 to vector<16x1xf32>
    %71 = arith.maximumf %65, %70 : vector<16x1xf32>
    %72 = math.rsqrt %71 : vector<16x1xf32>
    %73 = arith.mulf %69, %72 : vector<16x1xf32>
    %c16_i32 = arith.constant 16 : i32
    %74 = arith.muli %arg0, %c16_i32 : i32
    %75 = tpu.iota {dimensions = array<i32: 0>} : vector<16x1xi32>
    %76 = vector.broadcast %74 : i32 to vector<16x1xi32>
    %77 = arith.addi %76, %75 : vector<16x1xi32>
    %c16_i32_27 = arith.constant 16 : i32
    %78 = vector.broadcast %c16_i32_27 : i32 to vector<16x1xi32>
    %79 = arith.cmpi slt, %77, %78 : vector<16x1xi32>
    %cst_28 = arith.constant 0.000000e+00 : f32
    %80 = vector.broadcast %cst_28 : f32 to vector<16x1xf32>
    %81 = arith.select %79, %51, %80 : vector<16x1xi1>, vector<16x1xf32>
    %82 = vector.shape_cast %81 : vector<16x1xf32> to vector<1x16x1xf32>
    %cst_29 = arith.constant dense<0.000000e+00> : vector<1xf32>
    %83 = vector.multi_reduction <add>, %82, %cst_29 [1, 2] : vector<1x16x1xf32> to vector<1xf32>
    %84 = vector.shape_cast %83 : vector<1xf32> to vector<1x1x1xf32>
    %85 = vector.extract %84[0, 0, 0] : f32 from vector<1x1x1xf32>
    %cst_30 = arith.constant 0.000000e+00 : f32
    %86 = vector.broadcast %cst_30 : f32 to vector<16x1xf32>
    %87 = arith.select %79, %73, %86 : vector<16x1xi1>, vector<16x1xf32>
    %88 = vector.shape_cast %87 : vector<16x1xf32> to vector<1x16x1xf32>
    %cst_31 = arith.constant dense<0.000000e+00> : vector<1xf32>
    %89 = vector.multi_reduction <add>, %88, %cst_31 [1, 2] : vector<1x16x1xf32> to vector<1xf32>
    %90 = vector.shape_cast %89 : vector<1xf32> to vector<1x1x1xf32>
    %91 = vector.extract %90[0, 0, 0] : f32 from vector<1x1x1xf32>
    %92 = tpu.iota {dimensions = array<i32: 2>} : vector<1x1x8xi32>
    %c0_i32_32 = arith.constant 0 : i32
    %93 = vector.broadcast %c0_i32_32 : i32 to vector<1x1x8xi32>
    %94 = arith.cmpi eq, %92, %93 : vector<1x1x8xi32>
    %c1_i32_33 = arith.constant 1 : i32
    %95 = vector.broadcast %c1_i32_33 : i32 to vector<1x1x8xi32>
    %96 = arith.cmpi eq, %92, %95 : vector<1x1x8xi32>
    %cst_34 = arith.constant 0.000000e+00 : f32
    %97 = vector.broadcast %91 : f32 to vector<1x1x8xf32>
    %98 = vector.broadcast %cst_34 : f32 to vector<1x1x8xf32>
    %99 = arith.select %96, %97, %98 : vector<1x1x8xi1>, vector<1x1x8xf32>
    %100 = vector.broadcast %85 : f32 to vector<1x1x8xf32>
    %101 = arith.select %94, %100, %99 : vector<1x1x8xi1>, vector<1x1x8xf32>
    %c0_35 = arith.constant 0 : index
    %c0_36 = arith.constant 0 : index
    %c0_37 = arith.constant 0 : index
    %102 = vector.load %arg10[%c0_35, %c0_36, %c0_37] : memref<1x1x8xf32, #tpu.memory_space<vmem>>, vector<1x1x8xf32>
    tpu.vector_store %arg10[%c0_35, %c0_36, %c0_37], %101 {strides = array<i32>} : memref<1x1x8xf32, #tpu.memory_space<vmem>>, vector<1x1x8xf32>,
    %c0_38 = arith.constant 0 : index
    %c0_39 = arith.constant 0 : index
    %103 = vector.load %arg9[%c0_38, %c0_39] : memref<16x1xi32, #tpu.memory_space<vmem>>, vector<16x1xi32>
    tpu.vector_store %arg9[%c0_38, %c0_39], %43 {strides = array<i32>} : memref<16x1xi32, #tpu.memory_space<vmem>>, vector<16x1xi32>,
    return
  }
  func.func @transform_0(%arg0: i32) -> (i32, i32) {
    %c0_i32 = arith.constant 0 : i32
    %c0_i32_0 = arith.constant 0 : i32
    return %arg0, %c0_i32 : i32, i32
  }
  func.func @transform_1(%arg0: i32) -> (i32, i32) {
    %c0_i32 = arith.constant 0 : i32
    %c0_i32_0 = arith.constant 0 : i32
    %c0_i32_1 = arith.constant 0 : i32
    return %c0_i32, %c0_i32_0 : i32, i32
  }
  func.func @transform_2(%arg0: i32) -> (i32, i32) {
    %c0_i32 = arith.constant 0 : i32
    %c0_i32_0 = arith.constant 0 : i32
    %c0_i32_1 = arith.constant 0 : i32
    return %c0_i32, %c0_i32_0 : i32, i32
  }
  func.func @transform_3(%arg0: i32) -> (i32, i32) {
    %c0_i32 = arith.constant 0 : i32
    %c0_i32_0 = arith.constant 0 : i32
    %c0_i32_1 = arith.constant 0 : i32
    return %c0_i32, %c0_i32_0 : i32, i32
  }
  func.func @transform_4(%arg0: i32) -> (i32, i32) {
    %c0_i32 = arith.constant 0 : i32
    %c0_i32_0 = arith.constant 0 : i32
    %c0_i32_1 = arith.constant 0 : i32
    return %c0_i32, %c0_i32_0 : i32, i32
  }
  func.func @transform_5(%arg0: i32) -> (i32, i32) {
    %c0_i32 = arith.constant 0 : i32
    %c0_i32_0 = arith.constant 0 : i32
    %c0_i32_1 = arith.constant 0 : i32
    return %c0_i32, %c0_i32_0 : i32, i32
  }
  func.func @transform_6(%arg0: i32) -> (i32, i32) {
    %c0_i32 = arith.constant 0 : i32
    %c0_i32_0 = arith.constant 0 : i32
    %c0_i32_1 = arith.constant 0 : i32
    return %c0_i32, %c0_i32_0 : i32, i32
  }
  func.func @transform_7(%arg0: i32) -> (i32, i32) {
    %c0_i32 = arith.constant 0 : i32
    %c0_i32_0 = arith.constant 0 : i32
    %c0_i32_1 = arith.constant 0 : i32
    return %c0_i32, %c0_i32_0 : i32, i32
  }
  func.func @transform_8(%arg0: i32) -> (i32, i32) {
    %c0_i32 = arith.constant 0 : i32
    %c0_i32_0 = arith.constant 0 : i32
    return %arg0, %c0_i32 : i32, i32
  }
  func.func @transform_9(%arg0: i32) -> (i32, i32, i32) {
    %c0_i32 = arith.constant 0 : i32
    %c0_i32_0 = arith.constant 0 : i32
    %c0_i32_1 = arith.constant 0 : i32
    return %arg0, %c0_i32, %c0_i32_0 : i32, i32, i32
  }
}

</mosaic_0001>

<bundles_post_ra>
// kernel: tpu_custom_call.1
= control target key start
LH: loop header
LB: loop body
LE: loop exit
PB: predicated region body
PF: predicated region fallthrough
CT: control target
= control target key end

     0   :  { %15 = vsyncpa [#allocation3], 0  ;;  %v954_v1 = vmov 0.0   ;;  %vm955_vm0 = vmmov 0   ;;  %s1219_s0 = inlined_call_operand.vmem [shape: bf16[16,128], index: 0, kind: input, shape index: {}]   ;;  %s1220_s1 = inlined_call_operand.vmem [shape: bf16[128,64], index: 1, kind: input, shape index: {}]   ;;  %s1221_s2 = inlined_call_operand.vmem [shape: f32[1,64], index: 2, kind: input, shape index: {}]   ;;  %s1222_s3 = inlined_call_operand.vmem [shape: bf16[64,256], index: 3, kind: input, shape index: {}]   ;;  %s1223_s4 = inlined_call_operand.vmem [shape: bf16[256,64], index: 4, kind: input, shape index: {}]   ;;  %s1224_s5 = inlined_call_operand.vmem [shape: f32[1,256], index: 5, kind: input, shape index: {}]   ;;  %s1225_s6 = inlined_call_operand.vmem [shape: bf16[64,128], index: 6, kind: input, shape index: {}]   ;;  %s1226_s7 = inlined_call_operand.vmem [shape: f32[1,128], index: 7, kind: input, shape index: {}]   ;;  %s1227_s8 = inlined_call_operand.hbm [shape: s32[1,1,16], index: 8, kind: output, shape index: {0}]   ;;  %s1228_s9 = inlined_call_operand.hbm [shape: f32[1,1,8], index: 9, kind: output, shape index: {1}]  }
   0x1   :  { %v860_v0 = vld [vmem:[%s1220_s1 + $0x38] sm:$0xff]   ;;  %818 = vmatprep.subr.bf16.mxu0 %v954_v1  ;;  %v861_v2 = vld [vmem:[%s1220_s1 + $0x30] sm:$0xff]   ;;  %834 = vmatprep.mubr.msk.bf16.mxu0 %vm955_vm0, %v954_v1  ;;  %v862_v3 = vld [vmem:[%s1220_s1 + $0x28] sm:$0xff]  }
   0x2   :  { %819 = vmatpush3.bf16.msra.mxu0 %v860_v0  ;;  %v869_v4 = vld [vmem:[%s1222_s3 + $0x34] ss:$8 sps:$4 sm:$0xff]   ;;  %v871_v5 = vld [vmem:[%s1222_s3 + $0x30] ss:$8 sps:$4 sm:$0xff]   ;;  %v863_v6 = vld [vmem:[%s1220_s1 + $0x20] sm:$0xff]  }
   0x3   :  { %820 = vmatprep.subr.bf16.mxu0 %v954_v1  ;;  %v872_v7 = vld [vmem:[%s1222_s3 + $0x24] ss:$8 sps:$4 sm:$0xff]   ;;  %255 = vmatprep.subr.bf16.mxu1 %v869_v4  ;;  %v874_v8 = vld [vmem:[%s1222_s3 + $0x20] ss:$8 sps:$4 sm:$0xff]   ;;  %v864_v9 = vld [vmem:[%s1220_s1 + $0x18] sm:$0xff]  }
   0x4   :  { %256 = vmatpush1.bf16.msra.mxu1 %v871_v5  ;;  %v865_v10 = vld [vmem:[%s1220_s1 + $0x10] sm:$0xff]   ;;  %v866_v11 = vld [vmem:[%s1220_s1 + $0x8] sm:$0xff]   ;;  %v867_v12 = vld [vmem:[%s1220_s1] sm:$0xff]  }
   0x5   :  { %257 = vmatprep.subr.bf16.mxu1 %v872_v7  ;;  %v1058_v13 = vld [vmem:[%s1219_s0] sm:$0xff]  }
   0x6   :  { %821 = vmatpush3.bf16.msra.mxu0 %v861_v2 }
   0x7   :  { %822 = vmatprep.subr.bf16.mxu0 %v954_v1 }
   0x8   :  { %258 = vmatpush1.bf16.msra.mxu1 %v874_v8 }
   0xa   :  { %823 = vmatpush3.bf16.msra.mxu0 %v862_v3 }
   0xb   :  { %824 = vmatprep.subr.bf16.mxu0 %v954_v1 }
   0xe   :  { %825 = vmatpush3.bf16.msra.mxu0 %v863_v6 }
   0xf   :  { %826 = vmatprep.subr.bf16.mxu0 %v954_v1 }
  0x12   :  { %827 = vmatpush3.bf16.msra.mxu0 %v864_v9 }
  0x13   :  { %828 = vmatprep.subr.bf16.mxu0 %v954_v1 }
  0x16   :  { %829 = vmatpush3.bf16.msra.mxu0 %v865_v10 }
  0x17   :  { %830 = vmatprep.subr.bf16.mxu0 %v954_v1 }
  0x1a   :  { %831 = vmatpush3.bf16.msra.mxu0 %v866_v11 }
  0x1b   :  { %16 = vsyncpa [#allocation5], 0  ;;  %832 = vmatprep.subr.bf16.mxu0 %v954_v1  ;;  %v875_v14 = vld [vmem:[%s1222_s3 + $0x14] ss:$8 sps:$4 sm:$0xff]   ;;  %v877_v15 = vld [vmem:[%s1222_s3 + $0x10] ss:$8 sps:$4 sm:$0xff]   ;;  %v159_v27 = vlaneseq }
  0x1c   :  { %259 = vmatprep.subr.bf16.mxu1 %v875_v14  ;;  %v878_v16 = vld [vmem:[%s1222_s3 + $0x4] ss:$8 sps:$4 sm:$0xff]   ;;  %v880_v17 = vld [vmem:[%s1222_s3] ss:$8 sps:$4 sm:$0xff]   ;;  %v956_v18 = vmov 0   ;;  %vm243_vm1 = vcmask 523264  }
  0x1d   :  { %260 = vmatpush1.bf16.msra.mxu1 %v877_v15  ;;  %279 = vmatprep.mubr.bf16.mxu1 %v956_v18  ;;  %v732_v20 = vld [vmem:[%s1221_s2] ss:$0 sm:$0xff]  ;;  %v1088_v28 = vshrl.u32 %v159_v27, 7  ;;  %v1095_v44 = vand.u32 127, %v159_v27  ;;  %v881_v58 = vld [vmem:[%s1223_s4 + $0x78] sm:$0xff]   ;;  %v883_v60 = vld [vmem:[%s1223_s4 + $0x70] sm:$0xff]  }
  0x1e   :  { %833 = vmatpush3.bf16.msra.mxu0 %v867_v12  ;;  %261 = vmatprep.subr.bf16.mxu1 %v878_v16  ;;  %v202_v31 = vld [vmem:[%s1224_s5] sm:$0x3]  ;;  %v882_v59 = vld [vmem:[%s1223_s4 + $0x38] sm:$0xff]   ;;  %v884_v61 = vld [vmem:[%s1223_s4 + $0x30] sm:$0xff]   ;;  %vm700_vm12 = vcmask 130112  }
  0x1f   :  { %838 = vmatprep.subr.bf16.mxu0 %v954_v1  ;;  %v293_v29 = vsub.s32 0, %v1088_v28  ;;  %v297_v30 = vsub.s32 1, %v1088_v28  ;;  %v1098_v45 = vadd.s32 128, %v1095_v44  ;;  %v885_v62 = vld [vmem:[%s1223_s4 + $0x68] sm:$0xff]   ;;  %v887_v0 = vld [vmem:[%s1223_s4 + $0x60] sm:$0xff]   ;;  %v889_v3 = vld [vmem:[%s1223_s4 + $0x58] sm:$0xff]  }
  0x20   :  { %v886_v63 = vld [vmem:[%s1223_s4 + $0x28] sm:$0xff]   ;;  %v888_v2 = vld [vmem:[%s1223_s4 + $0x20] sm:$0xff]   ;;  %v890_v4 = vld [vmem:[%s1223_s4 + $0x18] sm:$0xff]  }
  0x21   :  { %835 = vmatmul.mubr.bf16.vlgmr.msra.gmra.mxu0 %v1058_v13  ;;  %262 = vmatpush1.bf16.msra.mxu1 %v880_v17  ;;  %v294_v32 = vrot.slane %v202_v31, %v293_v29  ;;  %v298_v33 = vrot.slane %v202_v31, %v297_v30  ;;  %v891_v5 = vld [vmem:[%s1223_s4 + $0x50] sm:$0xff]   ;;  %v893_v16 = vld [vmem:[%s1223_s4 + $0x48] sm:$0xff]   ;;  %v695_v30 = vadd.s32 4294967288, %v1095_v44 }
  0x22   :  { %846 = vmatprep.mubr.msk.bf16.mxu0 %vm955_vm0, %v954_v1  ;;  %791 = vmatprep.subr.bf16.mxu1 %v881_v58  ;;  %v892_v15 = vld [vmem:[%s1223_s4 + $0x10] sm:$0xff]   ;;  %v894_v17 = vld [vmem:[%s1223_s4 + $0x8] sm:$0xff]  }
  0xe1   :  { %v151_v19 = vpop.f32.mrf.mxu0 }
  0xe2   :  { %v1081_v23 = vadd.f32 %v732_v20, %v151_v19  ;;  %v895_v19 = vld [vmem:[%s1223_s4 + $0x40] sm:$0xff]  }
  0xe3   :  { %v836_v21 = vpop.f32.mrf.mxu0 }
  0xe4   :  { %v897_v21 = vld [vmem:[%s1225_s6 + $0x18] sm:$0xff]  }
  0xe5   :  { %v154_v22 = vpop.f32.mrf.mxu0  ;;  %839 = vmatpush3.bf16.msra.mxu0 %v897_v21 }
  0xe6   :  { %v1083_v24 = vadd.f32 %v732_v20, %v154_v22  ;;  %v896_v20 = vld [vmem:[%s1223_s4] sm:$0xff]   ;;  %840 = vmatprep.subr.bf16.mxu0 %v954_v1 }
  0xe7   :  { %v837_v25 = vpop.f32.mrf.mxu0 }
  0xe8   :  { %v158_v26 = vpack.c.bf16 %v1083_v24, %v1081_v23 }
  0xea   :  { %750 = vmatmul.mubr.msk.bf16.vlgmr.msra.gmra.mxu1 %vm243_vm1, %v158_v26 }
  0xeb   :  { %792 = vmatpush3.bf16.msra.mxu1 %v882_v59 }
  0xec   :  { %793 = vmatprep.subr.bf16.mxu1 %v883_v60 }
  0xef   :  { %794 = vmatpush3.bf16.msra.mxu1 %v884_v61 }
  0xf0   :  { %795 = vmatprep.subr.bf16.mxu1 %v885_v62 }
  0xf3   :  { %796 = vmatpush3.bf16.msra.mxu1 %v886_v63 }
  0xf4   :  { %797 = vmatprep.subr.bf16.mxu1 %v887_v0 }
  0xf7   :  { %798 = vmatpush3.bf16.msra.mxu1 %v888_v2 }
  0xf8   :  { %799 = vmatprep.subr.bf16.mxu1 %v889_v3 }
  0xfb   :  { %800 = vmatpush3.bf16.msra.mxu1 %v890_v4 }
  0xfc   :  { %801 = vmatprep.subr.bf16.mxu1 %v891_v5 }
  0xff   :  { %802 = vmatpush3.bf16.msra.mxu1 %v892_v15 }
 0x100   :  { %803 = vmatprep.subr.bf16.mxu1 %v893_v16 }
 0x103   :  { %804 = vmatpush3.bf16.msra.mxu1 %v894_v17 }
 0x104   :  { %805 = vmatprep.subr.bf16.mxu1 %v895_v19 }
 0x107   :  { %806 = vmatpush3.bf16.msra.mxu1 %v896_v20 }
 0x1aa   :  { %v281_v34 = vpop.f32.mrf.mxu1 }
 0x1ab   :  { %v301_v36 = vsub.f32 %v294_v32, %v281_v34 }
 0x1ac   :  { %v283_v35 = vpop.f32.mrf.mxu1 }
 0x1ad   :  { %v302_v37 = vsub.f32 %v298_v33, %v283_v35  ;;  %v693_v35 = vsub.s32 %v1095_v44, %v1088_v28 }
 0x1ae   :  { %v285_v38 = vpop.f32.mrf.mxu1 }
 0x1af   :  { %v305_v39 = vmin.f32 %v301_v36, %v302_v37  ;;  %v303_v41 = vsub.f32 %v294_v32, %v285_v38 }
 0x1b0   :  { %v287_v40 = vpop.f32.mrf.mxu1 }
 0x1b1   :  { %v304_v42 = vsub.f32 %v298_v33, %v287_v40  ;;  %306 = vmin.xlane.f32.xlu0 %v305_v39 }
 0x1b3   :  { %v308_v43 = vmin.f32 %v303_v41, %v304_v42 }
 0x1b5   :  { %309 = vmin.xlane.f32.xlu0 %v308_v43  ;;  %v898_v43 = vld [vmem:[%s1225_s6 + $0x10] sm:$0xff]  }
 0x1b6   :  { %841 = vmatpush3.bf16.msra.mxu0 %v898_v43 }
 0x1b7   :  { %842 = vmatprep.subr.bf16.mxu0 %v954_v1 }
 0x23a   :  { %v1100_v46 = vpop.xlane.xlu0 %306 }
 0x23b   :  { %vm311_vm2 = vcmp.le.f32.partialorder %v301_v36, %v1100_v46  ;;  %vm312_vm3 = vcmp.le.f32.partialorder %v302_v37, %v1100_v46  ;;  %vm503_vm10 = vcmp.lt.f32.partialorder %v1100_v46, inf  ;;  %v698_v36 = vsub.s32 %v695_v30, %v1088_v28  ;;  %v776_v46 = vld [vmem:[%s1226_s7] ss:$0 sm:$0xff]  ;;  %s958_s7 = smov [#allocation2]  }
 0x23c   :  { %v315_v47 = vsel %vm311_vm2, %v1095_v44, 2147483647  ;;  %v316_v48 = vsel %vm312_vm3, %v1098_v45, 2147483647  ;;  %vm702_vm3 = vcmask 122880   ;;  %s710_s14 = sshll.u32 %s958_s7, 4  ;;  %s711_s14 = int_to_ptr.vmem [resolvable:$true] %s710_s14 }
 0x23d   :  { %vm319_vm4 = vcmp.lt.s32.totalorder %v315_v47, %v316_v48  ;;  %s910_s15 = scalar_lea.vmem %s711_s14, 16  ;;  %s914_s1 = scalar_lea.vmem %s711_s14, 32 }
 0x23e   :  { %v1106_v49 = vpop.xlane.xlu0 %309  ;;  %v320_v50 = vsel %vm319_vm4, %v315_v47, %v316_v48  ;;  %v900_v47 = vld [vmem:[%s1225_s6] sm:$0xff]   ;;  %v38_v48 = vunpack.c.l.bf16 %v1058_v13  ;;  %p911_p0 = scmp.ne.s32.totalorder %s711_s14, %s910_s15  ;;  %p915_p1 = scmp.lt.s32.totalorder %s711_s14, %s711_s14 }
 0x23f   :  { %vm313_vm5 = vcmp.le.f32.partialorder %v303_v41, %v1106_v49  ;;  %vm314_vm6 = vcmp.le.f32.partialorder %v304_v42, %v1106_v49  ;;  %v322_v51 = vshra.s32 %v320_v50, 16  ;;  %v321_v6 = vand.u32 65535, %v320_v50  ;;  %p916_p2 = scmp.lt.s32.totalorder %s914_s1, %s910_s15 }
 0x240   :  { %v317_v52 = vsel %vm313_vm5, %v1095_v44, 2147483647  ;;  %v318_v53 = vsel %vm314_vm6, %v1098_v45, 2147483647  ;;  %vm504_vm11 = vcmp.lt.f32.partialorder %v1106_v49, inf  ;;  %v39_v50 = vunpack.c.h.bf16 %v1058_v13  ;;  %vm511_vm6 = vmpackc.low %vm503_vm10, %vm503_vm10 }
 0x241   :  { %v324_v54 = vcvt.s32.f32 %v322_v51  ;;  %vm335_vm7 = vcmp.lt.s32.totalorder %v317_v52, %v318_v53  ;;  %v323_v8 = vcvt.s32.f32 %v321_v6  ;;  %v957_v41 = vmov 1.0|1.0   ;;  %vm512_vm5 = vmpackc.low %vm504_vm11, %vm504_vm11  ;;  %p917_p3 = por %p916_p2, %p915_p1 }
 0x242   :  { %v336_v55 = vsel %vm335_vm7, %v317_v52, %v318_v53  ;;  %v621_v51 = vmul.f32 %v38_v48, %v38_v48  ;;  %v622_v52 = vmul.f32 %v39_v50, %v39_v50 }
 0x243   :  { %325 = vmin.xlane.f32.xlu1 %v324_v54  ;;  %v338_v56 = vshra.s32 %v336_v55, 16  ;;  %v337_v9 = vand.u32 65535, %v336_v55  ;;  %p918_p4 = pnand %p917_p3, %p911_p0 }
 0x245   :  { %v340_v57 = vcvt.s32.f32 %v338_v56  ;;  %v339_v12 = vcvt.s32.f32 %v337_v9  ;;  %v513_v56 = vsel %vm511_vm6, 65537, %v956_v18 }
 0x247   :  { %341 = vmin.xlane.f32.xlu1 %v340_v57 }
 0x2cc   :  { %v326_v7 = vpop.xlane.xlu1 %325 }
 0x2cd   :  { %vm327_vm8 = vcmp.eq.f32.partialorder %v324_v54, %v326_v7  ;;  %v332_v22 = vcvt.f32.s32 %v326_v7  ;;  %v514_v54 = vsel %vm512_vm5, 65537, %v956_v18 }
 0x2ce   :  { %v328_v10 = vsel %vm327_vm8, %v323_v8, inf  ;;  %vm656_vm8 = vcmask 7168  }
 0x2cf   :  { %329 = vmin.xlane.f32.xlu0 %v328_v10  ;;  %v333_v26 = vshll.u32 %v332_v22, 16 }
 0x2d0   :  { %v342_v11 = vpop.xlane.xlu1 %341 }
 0x2d1   :  { %vm343_vm9 = vcmp.eq.f32.partialorder %v340_v57, %v342_v11  ;;  %v348_v27 = vcvt.f32.s32 %v342_v11  ;;  %v775_v57 = vcombine.low %v513_v56, %v514_v54 }
 0x2d2   :  { %v344_v14 = vsel %vm343_vm9, %v339_v12, inf }
 0x2d3   :  { %345 = vmin.xlane.f32.xlu1 %v344_v14  ;;  %v349_v33 = vshll.u32 %v348_v27, 16  ;;  %623 = vadd.xlane.f32.xlu0 %v621_v51  ;;  %vm518_vm7 = vcmp.ne.s16.totalorder %v775_v57, 0 }
 0x2d7   :  { %625 = vadd.xlane.f32.xlu1 %v622_v52 }
 0x358   :  { %v330_v25 = vpop.xlane.xlu0 %329 }
 0x359   :  { %v331_v29 = vcvt.f32.s32 %v330_v25 }
 0x35b   :  { %v334_v31 = vadd.s32 %v333_v26, %v331_v29 }
 0x35c   :  { %v346_v32 = vpop.xlane.xlu1 %345 }
 0x35d   :  { %v347_v34 = vcvt.f32.s32 %v346_v32  ;;  %v505_v38 = vsel %vm503_vm10, %v334_v31, 0  ;;  %vm352_vm13 = vcmp.eq.s32.totalorder %v1098_v45, %v334_v31  ;;  %vm351_vm2 = vcmp.eq.s32.totalorder %v1095_v44, %v334_v31 }
 0x35e   :  { %v694_v28 = vrot.slane %v505_v38, %v693_v35 }
 0x35f   :  { %v350_v37 = vadd.s32 %v349_v33, %v347_v34 }
 0x360   :  { %v626_v16 = vpop.xlane.xlu1 %625 }
 0x361   :  { %vm354_vm14 = vcmp.eq.s32.totalorder %v1098_v45, %v350_v37  ;;  %vm353_vm15 = vcmp.eq.s32.totalorder %v1095_v44, %v350_v37  ;;  %v506_v39 = vsel %vm504_vm11, %v350_v37, 0  ;;  %v899_v45 = vld [vmem:[%s1225_s6 + $0x8] sm:$0xff]   ;;  %v634_v19 = vmax.f32 %v626_v16, 1e-30 }
 0x362   :  { %vm771_vm0 = vmpackc.low %vm354_vm14, %vm352_vm13  ;;  %v699_v40 = vrot.slane %v506_v39, %v698_v36  ;;  %843 = vmatpush3.bf16.msra.mxu0 %v899_v45 }
 0x363   :  { %772 = vmatprep.mubr.msk.bf16.mxu1 %vm771_vm0, %v957_v41  ;;  %vm773_vm4 = vmpackc.low %vm353_vm15, %vm351_vm2  ;;  %844 = vmatprep.subr.bf16.mxu0 %v954_v1 }
 0x364   :  { %774 = vmatmul.mubr.msk.bf16.vlgmr.msra.gmra.mxu1 %vm773_vm4, %v957_v41  ;;  %v701_v42 = vsel %vm700_vm12, %v699_v40, %v694_v28 }
 0x365   :  { %703 = vst.msk [vmem:[#allocation2] sm:$0x1] %vm702_vm3, %v701_v42 }
 0x366   :  { %845 = vmatpush3.bf16.msra.mxu0 %v900_v47 }
 0x424   :  { %v807_v53 = vpop.f32.mrf.mxu1 }
 0x426   :  { %v808_v1 = vpop.f32.mrf.mxu1 }
 0x427   :  { %v809_v58 = vadd.f32 %v808_v1, %v807_v53 }
 0x428   :  { %v810_v55 = vpop.f32.mrf.mxu1 }
 0x42a   :  { %v811_v13 = vpop.f32.mrf.mxu1 }
 0x42b   :  { %v812_v59 = vadd.f32 %v811_v13, %v810_v55 }
 0x42d   :  { %v502_v60 = vpack.c.bf16 %v812_v59, %v809_v58 }
 0x42f   :  { %v519_v49 = vsel %vm518_vm7, %v502_v60, 0 }
 0x430   :  { %847 = vmatmul.mubr.msk.bf16.vlgmr.msra.gmra.mxu0 %vm243_vm1, %v519_v49  ;;  %v520_v62 = vunpack.c.l.bf16 %v519_v49  ;;  %v521_v4 = vunpack.c.h.bf16 %v519_v49 }
 0x432   :  { %v522_v18 = vsub.f32 %v520_v62, %v1081_v23  ;;  %v523_v10 = vsub.f32 %v521_v4, %v1083_v24  ;;  %v624_v23 = vpop.xlane.xlu0 %623 }
 0x433   :  { %v633_v17 = vmax.f32 %v624_v23, 1e-30 }
 0x434   :  { %v524_v9 = vmul.f32 %v522_v18, %v522_v18  ;;  %v525_v14 = vmul.f32 %v523_v10, %v523_v10 }
 0x435   :  { %902 = vrsqrt.f32 %v633_v17 }
 0x436   :  { %v526_v12 = vsel %vm243_vm1, %v524_v9, 0.0  ;;  %v529_v15 = vsel %vm243_vm1, %v525_v14, 0.0  ;;  %904 = vrsqrt.f32 %v634_v19 }
 0x442   :  { %v903_v32 = vpop.eup %902 }
 0x443   :  { %v905_v34 = vpop.eup %904 }
 0x4f0   :  { %v608_v61 = vpop.f32.mrf.mxu0 }
 0x4f1   :  { %v609_v63 = vadd.f32 %v776_v46, %v608_v61 }
 0x4f2   :  { %v848_v0 = vpop.f32.mrf.mxu0 }
 0x4f3   :  { %v627_v2 = vmul.f32 %v609_v63, %v609_v63  ;;  %v615_v8 = vmul.f32 %v609_v63, %v38_v48 }
 0x4f4   :  { %v611_v3 = vpop.f32.mrf.mxu0 }
 0x4f5   :  { %v612_v5 = vadd.f32 %v776_v46, %v611_v3  ;;  %629 = vadd.xlane.f32.xlu0 %v627_v2 }
 0x4f6   :  { %v849_v6 = vpop.f32.mrf.mxu0 }
 0x4f7   :  { %v628_v7 = vmul.f32 %v612_v5, %v612_v5  ;;  %v616_v11 = vmul.f32 %v612_v5, %v39_v50 }
 0x4f9   :  { %631 = vadd.xlane.f32.xlu1 %v628_v7  ;;  %617 = vadd.xlane.f32.xlu0 %v615_v8 }
 0x4fd   :  { %619 = vadd.xlane.f32.xlu1 %v616_v11  ;;  %527 = vadd.xlane.f32.xlu0 %v526_v12 }
 0x501   :  { %530 = vadd.xlane.f32.xlu1 %v529_v15 }
 0x57e   :  { %v630_v20 = vpop.xlane.xlu0 %629 }
 0x57f   :  { %v639_v21 = vmax.f32 %v630_v20, 1e-30 }
 0x581   :  { %906 = vrsqrt.f32 %v639_v21 }
 0x582   :  { %v632_v24 = vpop.xlane.xlu1 %631  ;;  %v618_v22 = vpop.xlane.xlu0 %617 }
 0x583   :  { %v640_v25 = vmax.f32 %v632_v24, 1e-30  ;;  %v637_v36 = vmul.f32 %v903_v32, %v618_v22 }
 0x585   :  { %908 = vrsqrt.f32 %v640_v25 }
 0x586   :  { %v620_v26 = vpop.xlane.xlu1 %619  ;;  %v528_v27 = vpop.xlane.xlu0 %527 }
 0x587   :  { %v657_v30 = vsel %vm656_vm8, %v528_v27, 0.0  ;;  %v638_v38 = vmul.f32 %v905_v34, %v620_v26 }
 0x58a   :  { %v531_v29 = vpop.xlane.xlu1 %530 }
 0x58b   :  { %v658_v31 = vsel %vm656_vm8, %v531_v29, 0.0 }
 0x58c   :  { %v659_v33 = vadd.f32 %v658_v31, %v657_v30 }
 0x58e   :  { %v907_v35 = vpop.eup %906  ;;  %660 = vadd.xlane.f32.xlu0 %v659_v33 }
 0x58f   :  { %v643_v37 = vmul.f32 %v907_v35, %v637_v36 }
 0x591   :  { %v671_v40 = vsel %vm656_vm8, %v643_v37, 0.0 }
 0x592   :  { %v909_v39 = vpop.eup %908 }
 0x593   :  { %v644_v28 = vmul.f32 %v909_v39, %v638_v38 }
 0x595   :  { %v672_v41 = vsel %vm656_vm8, %v644_v28, 0.0 }
 0x596   :  { %v673_v42 = vadd.f32 %v672_v41, %v671_v40 }
 0x598   :  { %674 = vadd.xlane.f32.xlu1 %v673_v42 }
 0x599   :  { %921 = shalt.err (!%p918_p4)
}
 0x59a   :  { %713 = dma.vmem_to_hbm [thread:$0]  %s711_s14, 16, %s1227_s8, [#allocation3]   ;;  %vm684_vm1 = vcmp.eq.s32.totalorder %v1095_v44, 1  ;;  %vm683_vm9 = vcmp.eq.s32.totalorder %v1095_v44, 0  ;;  %vm689_vm10 = vcmask 57344  }
 0x59b   :  { %s959_s8 = smov [#allocation4]  }
 0x59c   :  { %s720_s18 = sshll.u32 %s959_s8, 4  ;;  %s721_s18 = int_to_ptr.vmem [resolvable:$true] %s720_s18 }
 0x59d   :  { %s930_s20 = scalar_lea.vmem %s721_s18, 16  ;;  %s934_s21 = scalar_lea.vmem %s721_s18, 32 }
 0x59e   :  { %p931_p5 = scmp.ne.s32.totalorder %s721_s18, %s930_s20  ;;  %p935_p6 = scmp.lt.s32.totalorder %s721_s18, %s721_s18 }
 0x59f   :  { %p936_p7 = scmp.lt.s32.totalorder %s934_s21, %s930_s20 }
 0x5a1   :  { %p937_p8 = por %p936_p7, %p935_p6 }
 0x5a3   :  { %p938_p9 = pnand %p937_p8, %p931_p5 }
 0x617   :  { %v661_v43 = vpop.xlane.xlu0 %660 }
 0x618   :  { %v662_v45 = vrot.slane %v661_v43, 4 }
 0x61a   :  { %v663_v47 = vadd.f32 %v662_v45, %v661_v43 }
 0x61c   :  { %v664_v48 = vrot.slane %v663_v47, 2 }
 0x61e   :  { %v665_v50 = vadd.f32 %v664_v48, %v663_v47 }
 0x620   :  { %v666_v51 = vrot.slane %v665_v50, 1 }
 0x621   :  { %v675_v52 = vpop.xlane.xlu1 %674 }
 0x622   :  { %v676_v53 = vrot.slane %v675_v52, 4  ;;  %v667_v1 = vadd.f32 %v666_v51, %v665_v50 }
 0x624   :  { %v677_v54 = vadd.f32 %v676_v53, %v675_v52  ;;  %850 = vpush %v667_v1 }
 0x626   :  { %v678_v55 = vrot.slane %v677_v54, 2 }
 0x628   :  { %v679_v56 = vadd.f32 %v678_v55, %v677_v54 }
 0x62a   :  { %v680_v13 = vrot.slane %v679_v56, 1 }
 0x62c   :  { %v681_v57 = vadd.f32 %v680_v13, %v679_v56 }
 0x62e   :  { %852 = vpush %v681_v57 }
 0x655   :  { %s851_s17 = spop %850 }
 0x656   :  { %v687_v59 = vstv %s851_s17 }
 0x65f   :  { %s853_s19 = spop %852 }
 0x660   :  { %v685_v58 = vstv %s853_s19 }
 0x661   :  { %v686_v60 = vsel %vm684_vm1, %v685_v58, 0.0 }
 0x662   :  { %v688_v49 = vsel %vm683_vm9, %v687_v59, %v686_v60 }
 0x663   :  { %690 = vst.msk [vmem:[#allocation4] sm:$0x1] %vm689_vm10, %v688_v49 }
 0x664   :  { %941 = shalt.err (!%p938_p9)
}
 0x665   :  { %723 = dma.vmem_to_hbm [thread:$0]  %s721_s18, 16, %s1228_s9, [#allocation5]  }
 0x666   :  { %950 = dma.done.wait [#allocation3], 16  }
 0x667   :  { %951 = vsyncadd [#allocation3], 4294967280 }
 0x668   :  { %952 = dma.done.wait [#allocation5], 16  }
 0x669   :  { %953 = vsyncadd [#allocation5], 4294967280 }
 0x66a   :  { %730 = vsyncpa [#allocation3], 1 }
 0x66b   :  { %731 = vsyncpa [#allocation5], 1 }

// kernel: tpu_custom_call.1
= control target key start
LH: loop header
LB: loop body
LE: loop exit
PB: predicated region body
PF: predicated region fallthrough
CT: control target
= control target key end

     0   :  { %v909_v1 = vmov 0.0   ;;  %vm910_vm0 = vmmov 0   ;;  %s1170_s0 = inlined_call_operand.vmem [shape: bf16[16,128], index: 0, kind: input, shape index: {}]   ;;  %s1171_s1 = inlined_call_operand.vmem [shape: bf16[128,64], index: 1, kind: input, shape index: {}]   ;;  %s1172_s2 = inlined_call_operand.vmem [shape: f32[1,64], index: 2, kind: input, shape index: {}]   ;;  %s1173_s3 = inlined_call_operand.vmem [shape: bf16[64,256], index: 3, kind: input, shape index: {}]   ;;  %s1174_s4 = inlined_call_operand.vmem [shape: bf16[256,64], index: 4, kind: input, shape index: {}]   ;;  %s1175_s5 = inlined_call_operand.vmem [shape: f32[1,256], index: 5, kind: input, shape index: {}]   ;;  %s1176_s6 = inlined_call_operand.vmem [shape: bf16[64,128], index: 6, kind: input, shape index: {}]   ;;  %s1177_s7 = inlined_call_operand.vmem [shape: f32[1,128], index: 7, kind: input, shape index: {}]   ;;  %s1178_s8 = inlined_call_operand.vmem [shape: s32[16,1], index: 8, kind: output, shape index: {0}]   ;;  %s1179_s9 = inlined_call_operand.hbm [shape: f32[1,1,8], index: 9, kind: output, shape index: {1}]  }
   0x1   :  { %v837_v0 = vld [vmem:[%s1171_s1 + $0x38] sm:$0xff]   ;;  %796 = vmatprep.subr.bf16.mxu0 %v909_v1  ;;  %v838_v2 = vld [vmem:[%s1171_s1 + $0x30] sm:$0xff]   ;;  %812 = vmatprep.mubr.msk.bf16.mxu0 %vm910_vm0, %v909_v1  ;;  %v839_v3 = vld [vmem:[%s1171_s1 + $0x28] sm:$0xff]  }
   0x2   :  { %797 = vmatpush3.bf16.msra.mxu0 %v837_v0  ;;  %v846_v4 = vld [vmem:[%s1173_s3 + $0x34] ss:$8 sps:$4 sm:$0xff]   ;;  %v848_v5 = vld [vmem:[%s1173_s3 + $0x30] ss:$8 sps:$4 sm:$0xff]   ;;  %v840_v6 = vld [vmem:[%s1171_s1 + $0x20] sm:$0xff]  }
   0x3   :  { %798 = vmatprep.subr.bf16.mxu0 %v909_v1  ;;  %v849_v7 = vld [vmem:[%s1173_s3 + $0x24] ss:$8 sps:$4 sm:$0xff]   ;;  %254 = vmatprep.subr.bf16.mxu1 %v846_v4  ;;  %v851_v8 = vld [vmem:[%s1173_s3 + $0x20] ss:$8 sps:$4 sm:$0xff]   ;;  %v841_v9 = vld [vmem:[%s1171_s1 + $0x18] sm:$0xff]  }
   0x4   :  { %255 = vmatpush1.bf16.msra.mxu1 %v848_v5  ;;  %v842_v10 = vld [vmem:[%s1171_s1 + $0x10] sm:$0xff]   ;;  %v843_v11 = vld [vmem:[%s1171_s1 + $0x8] sm:$0xff]   ;;  %v844_v12 = vld [vmem:[%s1171_s1] sm:$0xff]  }
   0x5   :  { %256 = vmatprep.subr.bf16.mxu1 %v849_v7  ;;  %v1012_v13 = vld [vmem:[%s1170_s0] sm:$0xff]  }
   0x6   :  { %799 = vmatpush3.bf16.msra.mxu0 %v838_v2 }
   0x7   :  { %800 = vmatprep.subr.bf16.mxu0 %v909_v1 }
   0x8   :  { %257 = vmatpush1.bf16.msra.mxu1 %v851_v8 }
   0xa   :  { %801 = vmatpush3.bf16.msra.mxu0 %v839_v3 }
   0xb   :  { %802 = vmatprep.subr.bf16.mxu0 %v909_v1 }
   0xe   :  { %803 = vmatpush3.bf16.msra.mxu0 %v840_v6 }
   0xf   :  { %804 = vmatprep.subr.bf16.mxu0 %v909_v1 }
  0x12   :  { %805 = vmatpush3.bf16.msra.mxu0 %v841_v9 }
  0x13   :  { %806 = vmatprep.subr.bf16.mxu0 %v909_v1 }
  0x16   :  { %807 = vmatpush3.bf16.msra.mxu0 %v842_v10 }
  0x17   :  { %808 = vmatprep.subr.bf16.mxu0 %v909_v1 }
  0x1a   :  { %809 = vmatpush3.bf16.msra.mxu0 %v843_v11 }
  0x1b   :  { %15 = vsyncpa [#allocation3], 0  ;;  %810 = vmatprep.subr.bf16.mxu0 %v909_v1  ;;  %v852_v14 = vld [vmem:[%s1173_s3 + $0x14] ss:$8 sps:$4 sm:$0xff]   ;;  %v854_v15 = vld [vmem:[%s1173_s3 + $0x10] ss:$8 sps:$4 sm:$0xff]   ;;  %v158_v27 = vlaneseq }
  0x1c   :  { %258 = vmatprep.subr.bf16.mxu1 %v852_v14  ;;  %v855_v16 = vld [vmem:[%s1173_s3 + $0x4] ss:$8 sps:$4 sm:$0xff]   ;;  %v857_v17 = vld [vmem:[%s1173_s3] ss:$8 sps:$4 sm:$0xff]   ;;  %v911_v18 = vmov 0   ;;  %vm242_vm1 = vcmask 523264  }
  0x1d   :  { %259 = vmatpush1.bf16.msra.mxu1 %v854_v15  ;;  %278 = vmatprep.mubr.bf16.mxu1 %v911_v18  ;;  %v710_v20 = vld [vmem:[%s1172_s2] ss:$0 sm:$0xff]  ;;  %v291_v28 = vshrl.u32 %v158_v27, 7  ;;  %v1045_v44 = vand.u32 127, %v158_v27  ;;  %v858_v58 = vld [vmem:[%s1174_s4 + $0x78] sm:$0xff]   ;;  %v860_v60 = vld [vmem:[%s1174_s4 + $0x70] sm:$0xff]  }
  0x1e   :  { %811 = vmatpush3.bf16.msra.mxu0 %v844_v12  ;;  %260 = vmatprep.subr.bf16.mxu1 %v855_v16  ;;  %v201_v31 = vld [vmem:[%s1175_s5] sm:$0x3]  ;;  %v859_v59 = vld [vmem:[%s1174_s4 + $0x38] sm:$0xff]   ;;  %v861_v61 = vld [vmem:[%s1174_s4 + $0x30] sm:$0xff]   ;;  %vm655_vm10 = vcmask 7168   ;;  %s913_s16 = smov [#allocation2]  }
  0x1f   :  { %816 = vmatprep.subr.bf16.mxu0 %v909_v1  ;;  %v292_v29 = vsub.s32 0, %v291_v28  ;;  %v296_v30 = vsub.s32 1, %v291_v28  ;;  %v1048_v45 = vadd.s32 128, %v1045_v44  ;;  %v862_v62 = vld [vmem:[%s1174_s4 + $0x68] sm:$0xff]   ;;  %v864_v0 = vld [vmem:[%s1174_s4 + $0x60] sm:$0xff]   ;;  %v866_v3 = vld [vmem:[%s1174_s4 + $0x58] sm:$0xff]  }
  0x20   :  { %v863_v63 = vld [vmem:[%s1174_s4 + $0x28] sm:$0xff]   ;;  %v865_v2 = vld [vmem:[%s1174_s4 + $0x20] sm:$0xff]   ;;  %v867_v4 = vld [vmem:[%s1174_s4 + $0x18] sm:$0xff]   ;;  %s700_s0 = sshll.u32 %s913_s16, 4  ;;  %s701_s0 = int_to_ptr.vmem [resolvable:$true] %s700_s0 }
  0x21   :  { %813 = vmatmul.mubr.bf16.vlgmr.msra.gmra.mxu0 %v1012_v13  ;;  %261 = vmatpush1.bf16.msra.mxu1 %v857_v17  ;;  %v293_v32 = vrot.slane %v201_v31, %v292_v29  ;;  %v297_v33 = vrot.slane %v201_v31, %v296_v30  ;;  %v868_v5 = vld [vmem:[%s1174_s4 + $0x50] sm:$0xff]   ;;  %v870_v16 = vld [vmem:[%s1174_s4 + $0x48] sm:$0xff]   ;;  %s887_s18 = scalar_lea.vmem %s701_s0, 16  ;;  %s891_s19 = scalar_lea.vmem %s701_s0, 32 }
  0x22   :  { %824 = vmatprep.mubr.msk.bf16.mxu0 %vm910_vm0, %v909_v1  ;;  %769 = vmatprep.subr.bf16.mxu1 %v858_v58  ;;  %v869_v15 = vld [vmem:[%s1174_s4 + $0x10] sm:$0xff]   ;;  %v871_v17 = vld [vmem:[%s1174_s4 + $0x8] sm:$0xff]   ;;  %p888_p0 = scmp.ne.s32.totalorder %s701_s0, %s887_s18  ;;  %p892_p1 = scmp.lt.s32.totalorder %s701_s0, %s701_s0 }
  0x23   :  { %p893_p2 = scmp.lt.s32.totalorder %s891_s19, %s887_s18 }
  0x25   :  { %p894_p3 = por %p893_p2, %p892_p1 }
  0x27   :  { %p895_p4 = pnand %p894_p3, %p888_p0 }
  0xe1   :  { %v150_v19 = vpop.f32.mrf.mxu0 }
  0xe2   :  { %v1035_v23 = vadd.f32 %v710_v20, %v150_v19  ;;  %v872_v19 = vld [vmem:[%s1174_s4 + $0x40] sm:$0xff]  }
  0xe3   :  { %v814_v21 = vpop.f32.mrf.mxu0 }
  0xe4   :  { %v874_v21 = vld [vmem:[%s1176_s6 + $0x18] sm:$0xff]  }
  0xe5   :  { %v153_v22 = vpop.f32.mrf.mxu0  ;;  %817 = vmatpush3.bf16.msra.mxu0 %v874_v21 }
  0xe6   :  { %v1037_v24 = vadd.f32 %v710_v20, %v153_v22  ;;  %v873_v20 = vld [vmem:[%s1174_s4] sm:$0xff]   ;;  %818 = vmatprep.subr.bf16.mxu0 %v909_v1 }
  0xe7   :  { %v815_v25 = vpop.f32.mrf.mxu0 }
  0xe8   :  { %v157_v26 = vpack.c.bf16 %v1037_v24, %v1035_v23 }
  0xea   :  { %728 = vmatmul.mubr.msk.bf16.vlgmr.msra.gmra.mxu1 %vm242_vm1, %v157_v26 }
  0xeb   :  { %770 = vmatpush3.bf16.msra.mxu1 %v859_v59 }
  0xec   :  { %771 = vmatprep.subr.bf16.mxu1 %v860_v60 }
  0xef   :  { %772 = vmatpush3.bf16.msra.mxu1 %v861_v61 }
  0xf0   :  { %773 = vmatprep.subr.bf16.mxu1 %v862_v62 }
  0xf3   :  { %774 = vmatpush3.bf16.msra.mxu1 %v863_v63 }
  0xf4   :  { %775 = vmatprep.subr.bf16.mxu1 %v864_v0 }
  0xf7   :  { %776 = vmatpush3.bf16.msra.mxu1 %v865_v2 }
  0xf8   :  { %777 = vmatprep.subr.bf16.mxu1 %v866_v3 }
  0xfb   :  { %778 = vmatpush3.bf16.msra.mxu1 %v867_v4 }
  0xfc   :  { %779 = vmatprep.subr.bf16.mxu1 %v868_v5 }
  0xff   :  { %780 = vmatpush3.bf16.msra.mxu1 %v869_v15 }
 0x100   :  { %781 = vmatprep.subr.bf16.mxu1 %v870_v16 }
 0x103   :  { %782 = vmatpush3.bf16.msra.mxu1 %v871_v17 }
 0x104   :  { %783 = vmatprep.subr.bf16.mxu1 %v872_v19 }
 0x107   :  { %784 = vmatpush3.bf16.msra.mxu1 %v873_v20 }
 0x1aa   :  { %v280_v34 = vpop.f32.mrf.mxu1 }
 0x1ab   :  { %v300_v36 = vsub.f32 %v293_v32, %v280_v34 }
 0x1ac   :  { %v282_v35 = vpop.f32.mrf.mxu1 }
 0x1ad   :  { %v301_v37 = vsub.f32 %v297_v33, %v282_v35 }
 0x1ae   :  { %v284_v38 = vpop.f32.mrf.mxu1 }
 0x1af   :  { %v304_v39 = vmin.f32 %v300_v36, %v301_v37  ;;  %v302_v41 = vsub.f32 %v293_v32, %v284_v38  ;;  %v876_v38 = vld [vmem:[%s1176_s6 + $0x8] sm:$0xff]  }
 0x1b0   :  { %v286_v40 = vpop.f32.mrf.mxu1 }
 0x1b1   :  { %v303_v42 = vsub.f32 %v297_v33, %v286_v40  ;;  %305 = vmin.xlane.f32.xlu0 %v304_v39  ;;  %v877_v39 = vld [vmem:[%s1176_s6] sm:$0xff]   ;;  %v37_v40 = vunpack.c.l.bf16 %v1012_v13 }
 0x1b3   :  { %v307_v43 = vmin.f32 %v302_v41, %v303_v42 }
 0x1b5   :  { %308 = vmin.xlane.f32.xlu0 %v307_v43 }
 0x23a   :  { %v1050_v46 = vpop.xlane.xlu0 %305 }
 0x23b   :  { %vm310_vm2 = vcmp.le.f32.partialorder %v300_v36, %v1050_v46  ;;  %vm311_vm3 = vcmp.le.f32.partialorder %v301_v37, %v1050_v46  ;;  %vm502_vm11 = vcmp.lt.f32.partialorder %v1050_v46, inf  ;;  %v912_v36 = vmov 1.0|1.0   ;;  %v875_v37 = vld [vmem:[%s1176_s6 + $0x10] sm:$0xff]   ;;  %v754_v46 = vld [vmem:[%s1177_s7] ss:$0 sm:$0xff] }
 0x23c   :  { %v314_v47 = vsel %vm310_vm2, %v1045_v44, 2147483647  ;;  %v315_v48 = vsel %vm311_vm3, %v1048_v45, 2147483647  ;;  %819 = vmatpush3.bf16.msra.mxu0 %v875_v37 }
 0x23d   :  { %vm318_vm4 = vcmp.lt.s32.totalorder %v314_v47, %v315_v48  ;;  %820 = vmatprep.subr.bf16.mxu0 %v909_v1 }
 0x23e   :  { %v1056_v49 = vpop.xlane.xlu0 %308  ;;  %v319_v50 = vsel %vm318_vm4, %v314_v47, %v315_v48 }
 0x23f   :  { %vm312_vm5 = vcmp.le.f32.partialorder %v302_v41, %v1056_v49  ;;  %vm313_vm6 = vcmp.le.f32.partialorder %v303_v42, %v1056_v49  ;;  %v321_v51 = vshra.s32 %v319_v50, 16  ;;  %v320_v6 = vand.u32 65535, %v319_v50 }
 0x240   :  { %v316_v52 = vsel %vm312_vm5, %v1045_v44, 2147483647  ;;  %v317_v53 = vsel %vm313_vm6, %v1048_v45, 2147483647  ;;  %vm503_vm12 = vcmp.lt.f32.partialorder %v1056_v49, inf  ;;  %821 = vmatpush3.bf16.msra.mxu0 %v876_v38  ;;  %v38_v41 = vunpack.c.h.bf16 %v1012_v13  ;;  %vm510_vm5 = vmpackc.low %vm502_vm11, %vm502_vm11 }
 0x241   :  { %v323_v54 = vcvt.s32.f32 %v321_v51  ;;  %vm334_vm7 = vcmp.lt.s32.totalorder %v316_v52, %v317_v53  ;;  %v322_v8 = vcvt.s32.f32 %v320_v6  ;;  %822 = vmatprep.subr.bf16.mxu0 %v909_v1  ;;  %v620_v42 = vmul.f32 %v37_v40, %v37_v40  ;;  %vm511_vm4 = vmpackc.low %vm503_vm12, %vm503_vm12 }
 0x242   :  { %v335_v55 = vsel %vm334_vm7, %v316_v52, %v317_v53  ;;  %v621_v43 = vmul.f32 %v38_v41, %v38_v41  ;;  %v513_v47 = vsel %vm511_vm4, 65537, %v911_v18  ;;  %v512_v50 = vsel %vm510_vm5, 65537, %v911_v18 }
 0x243   :  { %324 = vmin.xlane.f32.xlu1 %v323_v54  ;;  %v337_v56 = vshra.s32 %v335_v55, 16  ;;  %v336_v9 = vand.u32 65535, %v335_v55  ;;  %v753_v51 = vcombine.low %v512_v50, %v513_v47  ;;  %vm682_vm7 = vcmp.eq.s32.totalorder %v1045_v44, 0 }
 0x244   :  { %823 = vmatpush3.bf16.msra.mxu0 %v877_v39 }
 0x245   :  { %v339_v57 = vcvt.s32.f32 %v337_v56  ;;  %v338_v12 = vcvt.s32.f32 %v336_v9  ;;  %vm517_vm6 = vcmp.ne.s16.totalorder %v753_v51, 0 }
 0x247   :  { %340 = vmin.xlane.f32.xlu1 %v339_v57 }
 0x2cc   :  { %v325_v7 = vpop.xlane.xlu1 %324 }
 0x2cd   :  { %vm326_vm8 = vcmp.eq.f32.partialorder %v323_v54, %v325_v7  ;;  %v331_v22 = vcvt.f32.s32 %v325_v7 }
 0x2ce   :  { %v327_v10 = vsel %vm326_vm8, %v322_v8, inf  ;;  %vm688_vm8 = vcmask 57344  }
 0x2cf   :  { %328 = vmin.xlane.f32.xlu0 %v327_v10  ;;  %v332_v26 = vshll.u32 %v331_v22, 16 }
 0x2d0   :  { %v341_v11 = vpop.xlane.xlu1 %340 }
 0x2d1   :  { %vm342_vm9 = vcmp.eq.f32.partialorder %v339_v57, %v341_v11  ;;  %v347_v27 = vcvt.f32.s32 %v341_v11 }
 0x2d2   :  { %v343_v14 = vsel %vm342_vm9, %v338_v12, inf }
 0x2d3   :  { %344 = vmin.xlane.f32.xlu1 %v343_v14  ;;  %v348_v31 = vshll.u32 %v347_v27, 16  ;;  %622 = vadd.xlane.f32.xlu0 %v620_v42 }
 0x2d7   :  { %624 = vadd.xlane.f32.xlu1 %v621_v43 }
 0x358   :  { %v329_v25 = vpop.xlane.xlu0 %328 }
 0x359   :  { %v330_v28 = vcvt.f32.s32 %v329_v25 }
 0x35b   :  { %v333_v29 = vadd.s32 %v332_v26, %v330_v28 }
 0x35c   :  { %v345_v30 = vpop.xlane.xlu1 %344 }
 0x35d   :  { %v504_v32 = vsel %vm502_vm11, %v333_v29, 0  ;;  %v346_v33 = vcvt.f32.s32 %v345_v30  ;;  %vm351_vm13 = vcmp.eq.s32.totalorder %v1048_v45, %v333_v29  ;;  %vm350_vm2 = vcmp.eq.s32.totalorder %v1045_v44, %v333_v29 }
 0x35e   :  { %690 = vst.msk [vmem:[%s1178_s8] sm:$0xff] %vm655_vm10, %v504_v32 }
 0x35f   :  { %v349_v34 = vadd.s32 %v348_v31, %v346_v33 }
 0x360   :  { %v625_v9 = vpop.xlane.xlu1 %624 }
 0x361   :  { %v505_v35 = vsel %vm503_vm12, %v349_v34, 0  ;;  %vm353_vm14 = vcmp.eq.s32.totalorder %v1048_v45, %v349_v34  ;;  %vm352_vm15 = vcmp.eq.s32.totalorder %v1045_v44, %v349_v34  ;;  %v633_v11 = vmax.f32 %v625_v9, 1e-30 }
 0x362   :  { %691 = vst.msk [vmem:[%s1178_s8 + $0x8] sm:$0xff] %vm655_vm10, %v505_v35  ;;  %vm749_vm0 = vmpackc.low %vm353_vm14, %vm351_vm13 }
 0x363   :  { %750 = vmatprep.mubr.msk.bf16.mxu1 %vm749_vm0, %v912_v36  ;;  %vm751_vm3 = vmpackc.low %vm352_vm15, %vm350_vm2 }
 0x364   :  { %752 = vmatmul.mubr.msk.bf16.vlgmr.msra.gmra.mxu1 %vm751_vm3, %v912_v36 }
 0x424   :  { %v785_v45 = vpop.f32.mrf.mxu1 }
 0x426   :  { %v786_v1 = vpop.f32.mrf.mxu1 }
 0x427   :  { %v787_v52 = vadd.f32 %v786_v1, %v785_v45 }
 0x428   :  { %v788_v48 = vpop.f32.mrf.mxu1 }
 0x42a   :  { %v789_v13 = vpop.f32.mrf.mxu1 }
 0x42b   :  { %v790_v53 = vadd.f32 %v789_v13, %v788_v48 }
 0x42d   :  { %v501_v54 = vpack.c.bf16 %v790_v53, %v787_v52 }
 0x42f   :  { %v518_v49 = vsel %vm517_vm6, %v501_v54, 0 }
 0x430   :  { %825 = vmatmul.mubr.msk.bf16.vlgmr.msra.gmra.mxu0 %vm242_vm1, %v518_v49  ;;  %v519_v56 = vunpack.c.l.bf16 %v518_v49  ;;  %v520_v61 = vunpack.c.h.bf16 %v518_v49 }
 0x432   :  { %v521_v18 = vsub.f32 %v519_v56, %v1035_v23  ;;  %v522_v4 = vsub.f32 %v520_v61, %v1037_v24  ;;  %v623_v23 = vpop.xlane.xlu0 %622 }
 0x433   :  { %v632_v10 = vmax.f32 %v623_v23, 1e-30 }
 0x434   :  { %v523_v3 = vmul.f32 %v521_v18, %v521_v18  ;;  %v524_v7 = vmul.f32 %v522_v4, %v522_v4 }
 0x435   :  { %879 = vrsqrt.f32 %v632_v10 }
 0x436   :  { %v525_v6 = vsel %vm242_vm1, %v523_v3, 0.0  ;;  %v528_v8 = vsel %vm242_vm1, %v524_v7, 0.0  ;;  %881 = vrsqrt.f32 %v633_v11  ;;  %vm683_vm1 = vcmp.eq.s32.totalorder %v1045_v44, 1 }
 0x442   :  { %v880_v25 = vpop.eup %879 }
 0x443   :  { %v882_v27 = vpop.eup %881 }
 0x4f0   :  { %v607_v55 = vpop.f32.mrf.mxu0 }
 0x4f1   :  { %v608_v57 = vadd.f32 %v754_v46, %v607_v55 }
 0x4f2   :  { %v826_v58 = vpop.f32.mrf.mxu0 }
 0x4f3   :  { %v626_v59 = vmul.f32 %v608_v57, %v608_v57  ;;  %v614_v2 = vmul.f32 %v608_v57, %v37_v40 }
 0x4f4   :  { %v610_v60 = vpop.f32.mrf.mxu0 }
 0x4f5   :  { %v611_v62 = vadd.f32 %v754_v46, %v610_v60  ;;  %628 = vadd.xlane.f32.xlu0 %v626_v59 }
 0x4f6   :  { %v827_v63 = vpop.f32.mrf.mxu0 }
 0x4f7   :  { %v627_v0 = vmul.f32 %v611_v62, %v611_v62  ;;  %v615_v5 = vmul.f32 %v611_v62, %v38_v41 }
 0x4f9   :  { %630 = vadd.xlane.f32.xlu1 %v627_v0  ;;  %616 = vadd.xlane.f32.xlu0 %v614_v2 }
 0x4fd   :  { %618 = vadd.xlane.f32.xlu1 %v615_v5  ;;  %526 = vadd.xlane.f32.xlu0 %v525_v6 }
 0x501   :  { %529 = vadd.xlane.f32.xlu1 %v528_v8 }
 0x57e   :  { %v629_v12 = vpop.xlane.xlu0 %628 }
 0x57f   :  { %v638_v14 = vmax.f32 %v629_v12, 1e-30 }
 0x581   :  { %883 = vrsqrt.f32 %v638_v14 }
 0x582   :  { %v631_v24 = vpop.xlane.xlu1 %630  ;;  %v617_v15 = vpop.xlane.xlu0 %616 }
 0x583   :  { %v639_v16 = vmax.f32 %v631_v24, 1e-30  ;;  %v636_v29 = vmul.f32 %v880_v25, %v617_v15 }
 0x585   :  { %885 = vrsqrt.f32 %v639_v16 }
 0x586   :  { %v619_v17 = vpop.xlane.xlu1 %618  ;;  %v527_v19 = vpop.xlane.xlu0 %526 }
 0x587   :  { %v656_v21 = vsel %vm655_vm10, %v527_v19, 0.0  ;;  %v637_v31 = vmul.f32 %v882_v27, %v619_v17 }
 0x58a   :  { %v530_v20 = vpop.xlane.xlu1 %529 }
 0x58b   :  { %v657_v22 = vsel %vm655_vm10, %v530_v20, 0.0 }
 0x58c   :  { %v658_v26 = vadd.f32 %v657_v22, %v656_v21 }
 0x58e   :  { %v884_v28 = vpop.eup %883  ;;  %659 = vadd.xlane.f32.xlu0 %v658_v26 }
 0x58f   :  { %v642_v30 = vmul.f32 %v884_v28, %v636_v29 }
 0x591   :  { %v670_v34 = vsel %vm655_vm10, %v642_v30, 0.0 }
 0x592   :  { %v886_v32 = vpop.eup %885 }
 0x593   :  { %v643_v33 = vmul.f32 %v886_v32, %v637_v31 }
 0x595   :  { %v671_v35 = vsel %vm655_vm10, %v643_v33, 0.0 }
 0x596   :  { %v672_v36 = vadd.f32 %v671_v35, %v670_v34 }
 0x598   :  { %673 = vadd.xlane.f32.xlu1 %v672_v36 }
 0x617   :  { %v660_v37 = vpop.xlane.xlu0 %659 }
 0x618   :  { %v661_v38 = vrot.slane %v660_v37, 4 }
 0x61a   :  { %v662_v39 = vadd.f32 %v661_v38, %v660_v37 }
 0x61c   :  { %v663_v40 = vrot.slane %v662_v39, 2 }
 0x61e   :  { %v664_v41 = vadd.f32 %v663_v40, %v662_v39 }
 0x620   :  { %v665_v42 = vrot.slane %v664_v41, 1 }
 0x621   :  { %v674_v43 = vpop.xlane.xlu1 %673 }
 0x622   :  { %v675_v45 = vrot.slane %v674_v43, 4  ;;  %v666_v1 = vadd.f32 %v665_v42, %v664_v41 }
 0x624   :  { %v676_v47 = vadd.f32 %v675_v45, %v674_v43  ;;  %828 = vpush %v666_v1 }
 0x626   :  { %v677_v48 = vrot.slane %v676_v47, 2 }
 0x628   :  { %v678_v50 = vadd.f32 %v677_v48, %v676_v47 }
 0x62a   :  { %v679_v13 = vrot.slane %v678_v50, 1 }
 0x62c   :  { %v680_v51 = vadd.f32 %v679_v13, %v678_v50 }
 0x62e   :  { %830 = vpush %v680_v51 }
 0x655   :  { %s829_s7 = spop %828 }
 0x656   :  { %v686_v53 = vstv %s829_s7 }
 0x65f   :  { %s831_s17 = spop %830 }
 0x660   :  { %v684_v52 = vstv %s831_s17 }
 0x661   :  { %v685_v54 = vsel %vm683_vm1, %v684_v52, 0.0 }
 0x662   :  { %v687_v49 = vsel %vm682_vm7, %v686_v53, %v685_v54 }
 0x663   :  { %689 = vst.msk [vmem:[#allocation2] sm:$0x1] %vm688_vm8, %v687_v49 }
 0x664   :  { %898 = shalt.err (!%p895_p4)
}
 0x665   :  { %703 = dma.vmem_to_hbm [thread:$0]  %s701_s0, 16, %s1179_s9, [#allocation3]  }
 0x666   :  { %907 = dma.done.wait [#allocation3], 16  }
 0x667   :  { %908 = vsyncadd [#allocation3], 4294967280 }
 0x668   :  { %709 = vsyncpa [#allocation3], 1 }

</bundles_post_ra>
